<compile_context>
chip_gen: v7x
topology: tpu7x:2x2x1
jax: 0.10.0
libtpu: 0.0.40
codegen_flags: <defaults>
</compile_context>

<pallas_src>
import functools

import numpy as np
import jax
import jax.numpy as jnp
from jax.experimental import pallas as pl
from jax.experimental.pallas import tpu as pltpu


_LANES = 128
# 32 sublanes x 128 lanes: keeps (rows, 128) blocks tile-aligned for f32,
# bf16 and int8 operands alike.
_QUANTUM = 32 * _LANES            # 4096 samples per layout quantum
_DEFAULT_TILE_N = 65536           # samples per grid step (review: 32K-128K)
_VMEM_LIMIT_BYTES = 48 * 1024 * 1024  # > v5e 16 MiB default, < v7x 64 MiB/TC


def _choose_tiling(n, tile_n_max):
    """Pick (tile_n, num_tiles, n_pad).  tile_n is a multiple of _QUANTUM and
    we prefer >= 2 tiles when the data allows (v7x has two TensorCores)."""
    n = max(int(n), 1)
    n_q = -(-n // _QUANTUM)
    max_q = max(int(tile_n_max) // _QUANTUM, 1)
    tile_q = min(max_q, n_q)
    if n_q >= 2 and tile_q == n_q:
        tile_q = -(-n_q // 2)
    num_tiles = -(-n_q // tile_q)
    tile_n = tile_q * _QUANTUM
    return tile_n, num_tiles, num_tiles * tile_n


def _ece_partial_kernel(temp_ref, logits_ref, labels_ref, out_ref, *, lowers):
    """Per-tile partial sums for the cumulative-threshold ECE reduction.

    temp_ref:   (1,) f32 in SMEM            temperature
    logits_ref: (C, TR, 128) float          packed samples, class-major
    labels_ref: (TR, 128) int8              -1 marks padding
    out_ref:    (3, 1 + len(lowers)) f32    rows = [count, sum_conf, sum_acc]
                col 0     = totals over valid samples
                col 1 + j = sums over {confidence > lowers[j]}
    """
    num_classes = logits_ref.shape[0]
    inv_t = 1.0 / temp_ref[0]                       # ModelWithTemperature scale

    xs = [logits_ref[c].astype(jnp.float32) * inv_t for c in range(num_classes)]

    # Max over classes: short unrolled VPU maxes on full (TR, 128) vreg tiles.
    m = xs[0]
    for c in range(1, num_classes):
        m = jnp.maximum(m, xs[c])

    # Max softmax prob == 1 / sum(exp(x - m)) since the peak term is exp(0)=1.
    s = jnp.exp(xs[0] - m)
    for c in range(1, num_classes):
        s = s + jnp.exp(xs[c] - m)
    conf = pl.reciprocal(s, approx=False)           # exact: preserves bin placement

    # Argmax over classes, first index on ties (descending sweep).
    pred = jnp.zeros(m.shape, jnp.int32)
    for c in range(num_classes - 1, -1, -1):
        pred = jnp.where(xs[c] == m, jnp.int32(c), pred)

    labels = labels_ref[...].astype(jnp.int32)
    acc = (pred == labels).astype(jnp.float32)      # padding (-1) never matches
    valid = labels >= 0
    conf = jnp.where(valid, conf, 0.0)              # padded conf < every threshold

    def _sum(x):                                    # full reduce, kept rank-2
        return jnp.sum(x, keepdims=True)            # (1, 1)

    cnt_cols = [_sum(valid.astype(jnp.float32))]
    conf_cols = [_sum(conf)]
    acc_cols = [_sum(acc)]
    for lo in lowers:                               # static unroll (~10 thresholds)
        mask = conf > lo
        cnt_cols.append(_sum(mask.astype(jnp.float32)))
        conf_cols.append(_sum(jnp.where(mask, conf, 0.0)))
        acc_cols.append(_sum(jnp.where(mask, acc, 0.0)))

    out_ref[...] = jnp.concatenate(
        [jnp.concatenate(cnt_cols, axis=1),
         jnp.concatenate(conf_cols, axis=1),
         jnp.concatenate(acc_cols, axis=1)], axis=0)


def pack_inputs(logits, labels, *, tile_n=_DEFAULT_TILE_N):
    """One-time layout transform (transpose + pad + reshape).

    Hoist this out of the temperature-optimization loop: the packed tensors
    can be reused across many ece_loss_from_packed calls with different
    temperatures without re-moving the logits through HBM.

    Returns (logits_packed, labels_packed, n_valid, tile_n):
      logits_packed: (C, n_pad // 128, 128), same dtype as `logits`
      labels_packed: (n_pad // 128, 128) int8, padding marked -1
    """
    logits = jnp.asarray(logits)
    labels = jnp.asarray(labels)
    n, c = logits.shape
    tile_n, _, n_pad = _choose_tiling(n, tile_n)
    pad = n_pad - n
    labels8 = labels.astype(jnp.int8)
    if pad:
        logits = jnp.pad(logits, ((0, pad), (0, 0)))
        labels8 = jnp.pad(labels8, ((0, pad),), constant_values=-1)
    logits_packed = logits.T.reshape(c, n_pad // _LANES, _LANES)
    labels_packed = labels8.reshape(n_pad // _LANES, _LANES)
    return logits_packed, labels_packed, n, tile_n


def ece_loss_from_packed(logits_packed, labels_packed, n_valid, temperature,
                         *, n_bins: int = 15, tile_n: int = _DEFAULT_TILE_N):
    """ECE of temperature-scaled packed logits (see pack_inputs)."""
    c, rows, lanes = logits_packed.shape
    assert lanes == _LANES
    tile_rows = min(max(tile_n // _LANES, 1), rows)
    assert rows % tile_rows == 0, "packed rows must be divisible by tile rows"
    num_tiles = rows // tile_rows

    boundaries = np.linspace(0.0, 1.0, n_bins + 1).astype(np.float32)
    # Boundaries strictly below 1/C can never split the data (conf >= 1/C for
    # every valid sample), so their cumulative sums equal the totals column
    # and are skipped in-kernel (11 reachable of 15 bins for C=3).
    n_trivial = int(np.sum(boundaries[:n_bins] < (1.0 / c) * (1.0 - 1e-6)))
    lowers = tuple(float(v) for v in boundaries[n_trivial:n_bins])
    n_cols = 1 + len(lowers)

    temp = jnp.asarray(temperature, jnp.float32).reshape(1)
    kernel = functools.partial(_ece_partial_kernel, lowers=lowers)

    partials = pl.pallas_call(
        kernel,
        out_shape=jax.ShapeDtypeStruct((num_tiles, 3, n_cols), jnp.float32),
        grid_spec=pltpu.PrefetchScalarGridSpec(
            num_scalar_prefetch=0,
            grid=(num_tiles,),
            in_specs=[
                pl.BlockSpec(memory_space=pltpu.MemorySpace.SMEM),        # temp
                pl.BlockSpec((c, tile_rows, _LANES), lambda i: (0, i, 0)),
                pl.BlockSpec((tile_rows, _LANES), lambda i: (i, 0)),
            ],
            out_specs=pl.BlockSpec((None, 3, n_cols), lambda i: (i, 0, 0)),
        ),
        compiler_params=pltpu.CompilerParams(
            dimension_semantics=("parallel",),       # tiles independent
            vmem_limit_bytes=_VMEM_LIMIT_BYTES),
    )(temp, logits_packed, labels_packed)

    # Tiny final combine (3 * n_cols floats per tile) in plain JAX.
    # Note: f32 counts stay exact only below ~2^24 samples per threshold.
    sums = jnp.sum(partials, axis=0)                 # (3, n_cols)
    totals, tail = sums[:, :1], sums[:, 1:]
    cum = jnp.concatenate(
        [jnp.broadcast_to(totals, (3, n_trivial)), tail,
         jnp.zeros((3, 1), jnp.float32)], axis=1)     # (3, n_bins + 1)
    bin_sums = cum[:, :-1] - cum[:, 1:]               # torch's gt(lo) & le(hi)
    cnt, sconf, sacc = bin_sums[0], bin_sums[1], bin_sums[2]
    prop_in_bin = cnt / jnp.float32(n_valid)
    safe_cnt = jnp.where(cnt > 0.0, cnt, 1.0)
    gap = jnp.abs(sconf - sacc) / safe_cnt * prop_in_bin
    gap = jnp.where(cnt > 0.0, gap, 0.0)
    return jnp.sum(gap).reshape(1)                    # torch returns shape (1,)


def ece_loss(logits, labels, *, temperature=1.0, n_bins: int = 15,
             tile_n: int = _DEFAULT_TILE_N):
    """ECE of temperature-scaled logits.  logits: (N, C) float, labels: (N,) int.

    Matches _ECELoss()(ModelWithTemperature.temperature_scale(logits), labels).
    For repeated evaluation with different temperatures (set_temperature's
    optimizer loop), call pack_inputs() once and reuse ece_loss_from_packed().
    """
    logits_p, labels_p, n_valid, tile_n = pack_inputs(logits, labels, tile_n=tile_n)
    return ece_loss_from_packed(logits_p, labels_p, n_valid, temperature,
                                n_bins=n_bins, tile_n=tile_n)


def ece_loss_ref(logits, labels, temperature=1.0, n_bins: int = 15):
    """Pure-JAX mirror of the PyTorch _ECELoss on temperature-scaled logits."""
    scaled = logits.astype(jnp.float32) / jnp.float32(temperature)
    softmaxes = jax.nn.softmax(scaled, axis=1)
    confidences = jnp.max(softmaxes, axis=1)
    predictions = jnp.argmax(softmaxes, axis=1)
    accuracies = (predictions == labels).astype(jnp.float32)
    boundaries = np.linspace(0.0, 1.0, n_bins + 1, dtype=np.float32)
    n = confidences.shape[0]
    ece = jnp.zeros((1,), jnp.float32)
    for lo, hi in zip(boundaries[:-1], boundaries[1:]):
        in_bin = (confidences > lo) & (confidences <= hi)
        cnt = jnp.sum(in_bin.astype(jnp.float32))
        prop = cnt / n
        safe = jnp.where(cnt > 0, cnt, 1.0)
        acc_b = jnp.sum(jnp.where(in_bin, accuracies, 0.0)) / safe
        conf_b = jnp.sum(jnp.where(in_bin, confidences, 0.0)) / safe
        ece = ece + jnp.where(cnt > 0, jnp.abs(conf_b - acc_b) * prop, 0.0)
    return ece


if __name__ == "__main__":
    key = jax.random.PRNGKey(0)
    k1, k2 = jax.random.split(key)

    # SpliceAI-style 3-class logits, already flattened to (N, 3) as in
    # set_temperature; kept small for the smoke test.
    N, C = 12288, 3
    logits = jax.random.normal(k1, (N, C), dtype=jnp.float32) * 2.0
    labels = jax.random.randint(k2, (N,), 0, C, dtype=jnp.int32)

    # (temperature, n_samples, tile_n): exercises multi-tile grids, ragged
    # padding (-1 labels) and the fused temperature scaling (T != 1).
    cases = ((1.0, N, _DEFAULT_TILE_N), (1.7, 6000, 4096))
    for temperature, n, tile_n in cases:
        lg, lb = logits[:n], labels[:n]
        out = jax.block_until_ready(
            ece_loss(lg, lb, temperature=temperature, tile_n=tile_n))
        ref = jax.block_until_ready(ece_loss_ref(lg, lb, temperature))
        assert out.shape == (1,)
        assert jnp.allclose(out, ref, atol=1e-4, rtol=1e-4), (temperature, n, out, ref)

    print("KERNEL_OK")
</pallas_src>

<mosaic_0001>
module attributes {stable_mosaic.version = 11 : i64} {
  func.func @_ece_partial_kernel(%arg0: i32, %arg1: memref<1xf32, #tpu.memory_space<smem>>, %arg2: memref<3x64x128xf32, #tpu.memory_space<vmem>>, %arg3: memref<64x128xi8, #tpu.memory_space<vmem>>, %arg4: memref<1x3x11xf32, #tpu.memory_space<vmem>>) attributes {dimension_semantics = [#tpu.dimension_semantics<parallel>], iteration_bounds = array<i64: 2>, scalar_prefetch = 0 : i64, scratch_operands = 0 : i64, tpu.core_type = #tpu.core_type<tc>, window_params = [{transform_indices = @transform_0, window_bounds = array<i64: 1>}, {transform_indices = @transform_1, window_bounds = array<i64: 3, 64, 128>}, {transform_indices = @transform_2, window_bounds = array<i64: 64, 128>}, {transform_indices = @transform_3, window_bounds = array<i64: 1, 3, 11>}]} {
    %c0 = arith.constant 0 : index
    %0 = memref.load %arg1[%c0] : memref<1xf32, #tpu.memory_space<smem>>
    %cst = arith.constant 1.000000e+00 : f32
    %1 = arith.divf %cst, %0 : f32
    %c0_0 = arith.constant 0 : index
    %c0_1 = arith.constant 0 : index
    %c0_2 = arith.constant 0 : index
    %2 = vector.load %arg2[%c0_0, %c0_1, %c0_2] : memref<3x64x128xf32, #tpu.memory_space<vmem>>, vector<1x64x128xf32>
    %3 = vector.shape_cast %2 : vector<1x64x128xf32> to vector<64x128xf32>
    %4 = vector.broadcast %1 : f32 to vector<64x128xf32>
    %5 = arith.mulf %3, %4 : vector<64x128xf32>
    %c1 = arith.constant 1 : index
    %c0_3 = arith.constant 0 : index
    %c0_4 = arith.constant 0 : index
    %6 = vector.load %arg2[%c1, %c0_3, %c0_4] : memref<3x64x128xf32, #tpu.memory_space<vmem>>, vector<1x64x128xf32>
    %7 = vector.shape_cast %6 : vector<1x64x128xf32> to vector<64x128xf32>
    %8 = vector.broadcast %1 : f32 to vector<64x128xf32>
    %9 = arith.mulf %7, %8 : vector<64x128xf32>
    %c2 = arith.constant 2 : index
    %c0_5 = arith.constant 0 : index
    %c0_6 = arith.constant 0 : index
    %10 = vector.load %arg2[%c2, %c0_5, %c0_6] : memref<3x64x128xf32, #tpu.memory_space<vmem>>, vector<1x64x128xf32>
    %11 = vector.shape_cast %10 : vector<1x64x128xf32> to vector<64x128xf32>
    %12 = vector.broadcast %1 : f32 to vector<64x128xf32>
    %13 = arith.mulf %11, %12 : vector<64x128xf32>
    %14 = arith.maximumf %5, %9 : vector<64x128xf32>
    %15 = arith.maximumf %14, %13 : vector<64x128xf32>
    %16 = arith.subf %5, %15 : vector<64x128xf32>
    %17 = math.exp %16 : vector<64x128xf32>
    %18 = arith.subf %9, %15 : vector<64x128xf32>
    %19 = math.exp %18 : vector<64x128xf32>
    %20 = arith.addf %17, %19 : vector<64x128xf32>
    %21 = arith.subf %13, %15 : vector<64x128xf32>
    %22 = math.exp %21 : vector<64x128xf32>
    %23 = arith.addf %20, %22 : vector<64x128xf32>
    %24 = tpu.reciprocal %23 : vector<64x128xf32> -> vector<64x128xf32>
    %c0_i32 = arith.constant 0 : i32
    %25 = vector.broadcast %c0_i32 : i32 to vector<64x128xi32>
    %26 = arith.cmpf oeq, %13, %15 : vector<64x128xf32>
    %c2_i32 = arith.constant 2 : i32
    %27 = vector.broadcast %c2_i32 : i32 to vector<64x128xi32>
    %28 = arith.select %26, %27, %25 : vector<64x128xi1>, vector<64x128xi32>
    %29 = arith.cmpf oeq, %9, %15 : vector<64x128xf32>
    %c1_i32 = arith.constant 1 : i32
    %30 = vector.broadcast %c1_i32 : i32 to vector<64x128xi32>
    %31 = arith.select %29, %30, %28 : vector<64x128xi1>, vector<64x128xi32>
    %32 = arith.cmpf oeq, %5, %15 : vector<64x128xf32>
    %c0_i32_7 = arith.constant 0 : i32
    %33 = vector.broadcast %c0_i32_7 : i32 to vector<64x128xi32>
    %34 = arith.select %32, %33, %31 : vector<64x128xi1>, vector<64x128xi32>
    %c0_8 = arith.constant 0 : index
    %c0_9 = arith.constant 0 : index
    %35 = vector.load %arg3[%c0_8, %c0_9] : memref<64x128xi8, #tpu.memory_space<vmem>>, vector<64x128xi8>
    %36 = arith.extsi %35 : vector<64x128xi8> to vector<64x128xi32>
    %37 = arith.cmpi eq, %34, %36 : vector<64x128xi32>
    %38 = arith.extui %37 : vector<64x128xi1> to vector<64x128xi32>
    %39 = arith.sitofp %38 : vector<64x128xi32> to vector<64x128xf32>
    %c0_i32_10 = arith.constant 0 : i32
    %40 = vector.broadcast %c0_i32_10 : i32 to vector<64x128xi32>
    %41 = arith.cmpi sge, %36, %40 : vector<64x128xi32>
    %cst_11 = arith.constant 0.000000e+00 : f32
    %42 = vector.broadcast %cst_11 : f32 to vector<64x128xf32>
    %43 = arith.select %41, %24, %42 : vector<64x128xi1>, vector<64x128xf32>
    %44 = arith.extui %41 : vector<64x128xi1> to vector<64x128xi32>
    %45 = arith.sitofp %44 : vector<64x128xi32> to vector<64x128xf32>
    %46 = vector.shape_cast %45 : vector<64x128xf32> to vector<1x64x128xf32>
    %cst_12 = arith.constant dense<0.000000e+00> : vector<1xf32>
    %47 = vector.multi_reduction <add>, %46, %cst_12 [1, 2] : vector<1x64x128xf32> to vector<1xf32>
    %48 = vector.shape_cast %47 : vector<1xf32> to vector<1x1x1xf32>
    %49 = vector.extract %48[0, 0, 0] : f32 from vector<1x1x1xf32>
    %50 = vector.broadcast %49 : f32 to vector<1x1xf32>
    %51 = vector.shape_cast %43 : vector<64x128xf32> to vector<1x64x128xf32>
    %cst_13 = arith.constant dense<0.000000e+00> : vector<1xf32>
    %52 = vector.multi_reduction <add>, %51, %cst_13 [1, 2] : vector<1x64x128xf32> to vector<1xf32>
    %53 = vector.shape_cast %52 : vector<1xf32> to vector<1x1x1xf32>
    %54 = vector.extract %53[0, 0, 0] : f32 from vector<1x1x1xf32>
    %55 = vector.broadcast %54 : f32 to vector<1x1xf32>
    %56 = vector.shape_cast %39 : vector<64x128xf32> to vector<1x64x128xf32>
    %cst_14 = arith.constant dense<0.000000e+00> : vector<1xf32>
    %57 = vector.multi_reduction <add>, %56, %cst_14 [1, 2] : vector<1x64x128xf32> to vector<1xf32>
    %58 = vector.shape_cast %57 : vector<1xf32> to vector<1x1x1xf32>
    %59 = vector.extract %58[0, 0, 0] : f32 from vector<1x1x1xf32>
    %60 = vector.broadcast %59 : f32 to vector<1x1xf32>
    %cst_15 = arith.constant 0.333333343 : f32
    %61 = vector.broadcast %cst_15 : f32 to vector<64x128xf32>
    %62 = arith.cmpf ogt, %43, %61 : vector<64x128xf32>
    %63 = arith.extui %62 : vector<64x128xi1> to vector<64x128xi32>
    %64 = arith.sitofp %63 : vector<64x128xi32> to vector<64x128xf32>
    %65 = vector.shape_cast %64 : vector<64x128xf32> to vector<1x64x128xf32>
    %cst_16 = arith.constant dense<0.000000e+00> : vector<1xf32>
    %66 = vector.multi_reduction <add>, %65, %cst_16 [1, 2] : vector<1x64x128xf32> to vector<1xf32>
    %67 = vector.shape_cast %66 : vector<1xf32> to vector<1x1x1xf32>
    %68 = vector.extract %67[0, 0, 0] : f32 from vector<1x1x1xf32>
    %69 = vector.broadcast %68 : f32 to vector<1x1xf32>
    %cst_17 = arith.constant 0.000000e+00 : f32
    %70 = vector.broadcast %cst_17 : f32 to vector<64x128xf32>
    %71 = arith.select %62, %43, %70 : vector<64x128xi1>, vector<64x128xf32>
    %72 = vector.shape_cast %71 : vector<64x128xf32> to vector<1x64x128xf32>
    %cst_18 = arith.constant dense<0.000000e+00> : vector<1xf32>
    %73 = vector.multi_reduction <add>, %72, %cst_18 [1, 2] : vector<1x64x128xf32> to vector<1xf32>
    %74 = vector.shape_cast %73 : vector<1xf32> to vector<1x1x1xf32>
    %75 = vector.extract %74[0, 0, 0] : f32 from vector<1x1x1xf32>
    %76 = vector.broadcast %75 : f32 to vector<1x1xf32>
    %cst_19 = arith.constant 0.000000e+00 : f32
    %77 = vector.broadcast %cst_19 : f32 to vector<64x128xf32>
    %78 = arith.select %62, %39, %77 : vector<64x128xi1>, vector<64x128xf32>
    %79 = vector.shape_cast %78 : vector<64x128xf32> to vector<1x64x128xf32>
    %cst_20 = arith.constant dense<0.000000e+00> : vector<1xf32>
    %80 = vector.multi_reduction <add>, %79, %cst_20 [1, 2] : vector<1x64x128xf32> to vector<1xf32>
    %81 = vector.shape_cast %80 : vector<1xf32> to vector<1x1x1xf32>
    %82 = vector.extract %81[0, 0, 0] : f32 from vector<1x1x1xf32>
    %83 = vector.broadcast %82 : f32 to vector<1x1xf32>
    %cst_21 = arith.constant 4.000000e-01 : f32
    %84 = vector.broadcast %cst_21 : f32 to vector<64x128xf32>
    %85 = arith.cmpf ogt, %43, %84 : vector<64x128xf32>
    %86 = arith.extui %85 : vector<64x128xi1> to vector<64x128xi32>
    %87 = arith.sitofp %86 : vector<64x128xi32> to vector<64x128xf32>
    %88 = vector.shape_cast %87 : vector<64x128xf32> to vector<1x64x128xf32>
    %cst_22 = arith.constant dense<0.000000e+00> : vector<1xf32>
    %89 = vector.multi_reduction <add>, %88, %cst_22 [1, 2] : vector<1x64x128xf32> to vector<1xf32>
    %90 = vector.shape_cast %89 : vector<1xf32> to vector<1x1x1xf32>
    %91 = vector.extract %90[0, 0, 0] : f32 from vector<1x1x1xf32>
    %92 = vector.broadcast %91 : f32 to vector<1x1xf32>
    %cst_23 = arith.constant 0.000000e+00 : f32
    %93 = vector.broadcast %cst_23 : f32 to vector<64x128xf32>
    %94 = arith.select %85, %43, %93 : vector<64x128xi1>, vector<64x128xf32>
    %95 = vector.shape_cast %94 : vector<64x128xf32> to vector<1x64x128xf32>
    %cst_24 = arith.constant dense<0.000000e+00> : vector<1xf32>
    %96 = vector.multi_reduction <add>, %95, %cst_24 [1, 2] : vector<1x64x128xf32> to vector<1xf32>
    %97 = vector.shape_cast %96 : vector<1xf32> to vector<1x1x1xf32>
    %98 = vector.extract %97[0, 0, 0] : f32 from vector<1x1x1xf32>
    %99 = vector.broadcast %98 : f32 to vector<1x1xf32>
    %cst_25 = arith.constant 0.000000e+00 : f32
    %100 = vector.broadcast %cst_25 : f32 to vector<64x128xf32>
    %101 = arith.select %85, %39, %100 : vector<64x128xi1>, vector<64x128xf32>
    %102 = vector.shape_cast %101 : vector<64x128xf32> to vector<1x64x128xf32>
    %cst_26 = arith.constant dense<0.000000e+00> : vector<1xf32>
    %103 = vector.multi_reduction <add>, %102, %cst_26 [1, 2] : vector<1x64x128xf32> to vector<1xf32>
    %104 = vector.shape_cast %103 : vector<1xf32> to vector<1x1x1xf32>
    %105 = vector.extract %104[0, 0, 0] : f32 from vector<1x1x1xf32>
    %106 = vector.broadcast %105 : f32 to vector<1x1xf32>
    %cst_27 = arith.constant 0.466666669 : f32
    %107 = vector.broadcast %cst_27 : f32 to vector<64x128xf32>
    %108 = arith.cmpf ogt, %43, %107 : vector<64x128xf32>
    %109 = arith.extui %108 : vector<64x128xi1> to vector<64x128xi32>
    %110 = arith.sitofp %109 : vector<64x128xi32> to vector<64x128xf32>
    %111 = vector.shape_cast %110 : vector<64x128xf32> to vector<1x64x128xf32>
    %cst_28 = arith.constant dense<0.000000e+00> : vector<1xf32>
    %112 = vector.multi_reduction <add>, %111, %cst_28 [1, 2] : vector<1x64x128xf32> to vector<1xf32>
    %113 = vector.shape_cast %112 : vector<1xf32> to vector<1x1x1xf32>
    %114 = vector.extract %113[0, 0, 0] : f32 from vector<1x1x1xf32>
    %115 = vector.broadcast %114 : f32 to vector<1x1xf32>
    %cst_29 = arith.constant 0.000000e+00 : f32
    %116 = vector.broadcast %cst_29 : f32 to vector<64x128xf32>
    %117 = arith.select %108, %43, %116 : vector<64x128xi1>, vector<64x128xf32>
    %118 = vector.shape_cast %117 : vector<64x128xf32> to vector<1x64x128xf32>
    %cst_30 = arith.constant dense<0.000000e+00> : vector<1xf32>
    %119 = vector.multi_reduction <add>, %118, %cst_30 [1, 2] : vector<1x64x128xf32> to vector<1xf32>
    %120 = vector.shape_cast %119 : vector<1xf32> to vector<1x1x1xf32>
    %121 = vector.extract %120[0, 0, 0] : f32 from vector<1x1x1xf32>
    %122 = vector.broadcast %121 : f32 to vector<1x1xf32>
    %cst_31 = arith.constant 0.000000e+00 : f32
    %123 = vector.broadcast %cst_31 : f32 to vector<64x128xf32>
    %124 = arith.select %108, %39, %123 : vector<64x128xi1>, vector<64x128xf32>
    %125 = vector.shape_cast %124 : vector<64x128xf32> to vector<1x64x128xf32>
    %cst_32 = arith.constant dense<0.000000e+00> : vector<1xf32>
    %126 = vector.multi_reduction <add>, %125, %cst_32 [1, 2] : vector<1x64x128xf32> to vector<1xf32>
    %127 = vector.shape_cast %126 : vector<1xf32> to vector<1x1x1xf32>
    %128 = vector.extract %127[0, 0, 0] : f32 from vector<1x1x1xf32>
    %129 = vector.broadcast %128 : f32 to vector<1x1xf32>
    %cst_33 = arith.constant 0.533333361 : f32
    %130 = vector.broadcast %cst_33 : f32 to vector<64x128xf32>
    %131 = arith.cmpf ogt, %43, %130 : vector<64x128xf32>
    %132 = arith.extui %131 : vector<64x128xi1> to vector<64x128xi32>
    %133 = arith.sitofp %132 : vector<64x128xi32> to vector<64x128xf32>
    %134 = vector.shape_cast %133 : vector<64x128xf32> to vector<1x64x128xf32>
    %cst_34 = arith.constant dense<0.000000e+00> : vector<1xf32>
    %135 = vector.multi_reduction <add>, %134, %cst_34 [1, 2] : vector<1x64x128xf32> to vector<1xf32>
    %136 = vector.shape_cast %135 : vector<1xf32> to vector<1x1x1xf32>
    %137 = vector.extract %136[0, 0, 0] : f32 from vector<1x1x1xf32>
    %138 = vector.broadcast %137 : f32 to vector<1x1xf32>
    %cst_35 = arith.constant 0.000000e+00 : f32
    %139 = vector.broadcast %cst_35 : f32 to vector<64x128xf32>
    %140 = arith.select %131, %43, %139 : vector<64x128xi1>, vector<64x128xf32>
    %141 = vector.shape_cast %140 : vector<64x128xf32> to vector<1x64x128xf32>
    %cst_36 = arith.constant dense<0.000000e+00> : vector<1xf32>
    %142 = vector.multi_reduction <add>, %141, %cst_36 [1, 2] : vector<1x64x128xf32> to vector<1xf32>
    %143 = vector.shape_cast %142 : vector<1xf32> to vector<1x1x1xf32>
    %144 = vector.extract %143[0, 0, 0] : f32 from vector<1x1x1xf32>
    %145 = vector.broadcast %144 : f32 to vector<1x1xf32>
    %cst_37 = arith.constant 0.000000e+00 : f32
    %146 = vector.broadcast %cst_37 : f32 to vector<64x128xf32>
    %147 = arith.select %131, %39, %146 : vector<64x128xi1>, vector<64x128xf32>
    %148 = vector.shape_cast %147 : vector<64x128xf32> to vector<1x64x128xf32>
    %cst_38 = arith.constant dense<0.000000e+00> : vector<1xf32>
    %149 = vector.multi_reduction <add>, %148, %cst_38 [1, 2] : vector<1x64x128xf32> to vector<1xf32>
    %150 = vector.shape_cast %149 : vector<1xf32> to vector<1x1x1xf32>
    %151 = vector.extract %150[0, 0, 0] : f32 from vector<1x1x1xf32>
    %152 = vector.broadcast %151 : f32 to vector<1x1xf32>
    %cst_39 = arith.constant 6.000000e-01 : f32
    %153 = vector.broadcast %cst_39 : f32 to vector<64x128xf32>
    %154 = arith.cmpf ogt, %43, %153 : vector<64x128xf32>
    %155 = arith.extui %154 : vector<64x128xi1> to vector<64x128xi32>
    %156 = arith.sitofp %155 : vector<64x128xi32> to vector<64x128xf32>
    %157 = vector.shape_cast %156 : vector<64x128xf32> to vector<1x64x128xf32>
    %cst_40 = arith.constant dense<0.000000e+00> : vector<1xf32>
    %158 = vector.multi_reduction <add>, %157, %cst_40 [1, 2] : vector<1x64x128xf32> to vector<1xf32>
    %159 = vector.shape_cast %158 : vector<1xf32> to vector<1x1x1xf32>
    %160 = vector.extract %159[0, 0, 0] : f32 from vector<1x1x1xf32>
    %161 = vector.broadcast %160 : f32 to vector<1x1xf32>
    %cst_41 = arith.constant 0.000000e+00 : f32
    %162 = vector.broadcast %cst_41 : f32 to vector<64x128xf32>
    %163 = arith.select %154, %43, %162 : vector<64x128xi1>, vector<64x128xf32>
    %164 = vector.shape_cast %163 : vector<64x128xf32> to vector<1x64x128xf32>
    %cst_42 = arith.constant dense<0.000000e+00> : vector<1xf32>
    %165 = vector.multi_reduction <add>, %164, %cst_42 [1, 2] : vector<1x64x128xf32> to vector<1xf32>
    %166 = vector.shape_cast %165 : vector<1xf32> to vector<1x1x1xf32>
    %167 = vector.extract %166[0, 0, 0] : f32 from vector<1x1x1xf32>
    %168 = vector.broadcast %167 : f32 to vector<1x1xf32>
    %cst_43 = arith.constant 0.000000e+00 : f32
    %169 = vector.broadcast %cst_43 : f32 to vector<64x128xf32>
    %170 = arith.select %154, %39, %169 : vector<64x128xi1>, vector<64x128xf32>
    %171 = vector.shape_cast %170 : vector<64x128xf32> to vector<1x64x128xf32>
    %cst_44 = arith.constant dense<0.000000e+00> : vector<1xf32>
    %172 = vector.multi_reduction <add>, %171, %cst_44 [1, 2] : vector<1x64x128xf32> to vector<1xf32>
    %173 = vector.shape_cast %172 : vector<1xf32> to vector<1x1x1xf32>
    %174 = vector.extract %173[0, 0, 0] : f32 from vector<1x1x1xf32>
    %175 = vector.broadcast %174 : f32 to vector<1x1xf32>
    %cst_45 = arith.constant 0.666666686 : f32
    %176 = vector.broadcast %cst_45 : f32 to vector<64x128xf32>
    %177 = arith.cmpf ogt, %43, %176 : vector<64x128xf32>
    %178 = arith.extui %177 : vector<64x128xi1> to vector<64x128xi32>
    %179 = arith.sitofp %178 : vector<64x128xi32> to vector<64x128xf32>
    %180 = vector.shape_cast %179 : vector<64x128xf32> to vector<1x64x128xf32>
    %cst_46 = arith.constant dense<0.000000e+00> : vector<1xf32>
    %181 = vector.multi_reduction <add>, %180, %cst_46 [1, 2] : vector<1x64x128xf32> to vector<1xf32>
    %182 = vector.shape_cast %181 : vector<1xf32> to vector<1x1x1xf32>
    %183 = vector.extract %182[0, 0, 0] : f32 from vector<1x1x1xf32>
    %184 = vector.broadcast %183 : f32 to vector<1x1xf32>
    %cst_47 = arith.constant 0.000000e+00 : f32
    %185 = vector.broadcast %cst_47 : f32 to vector<64x128xf32>
    %186 = arith.select %177, %43, %185 : vector<64x128xi1>, vector<64x128xf32>
    %187 = vector.shape_cast %186 : vector<64x128xf32> to vector<1x64x128xf32>
    %cst_48 = arith.constant dense<0.000000e+00> : vector<1xf32>
    %188 = vector.multi_reduction <add>, %187, %cst_48 [1, 2] : vector<1x64x128xf32> to vector<1xf32>
    %189 = vector.shape_cast %188 : vector<1xf32> to vector<1x1x1xf32>
    %190 = vector.extract %189[0, 0, 0] : f32 from vector<1x1x1xf32>
    %191 = vector.broadcast %190 : f32 to vector<1x1xf32>
    %cst_49 = arith.constant 0.000000e+00 : f32
    %192 = vector.broadcast %cst_49 : f32 to vector<64x128xf32>
    %193 = arith.select %177, %39, %192 : vector<64x128xi1>, vector<64x128xf32>
    %194 = vector.shape_cast %193 : vector<64x128xf32> to vector<1x64x128xf32>
    %cst_50 = arith.constant dense<0.000000e+00> : vector<1xf32>
    %195 = vector.multi_reduction <add>, %194, %cst_50 [1, 2] : vector<1x64x128xf32> to vector<1xf32>
    %196 = vector.shape_cast %195 : vector<1xf32> to vector<1x1x1xf32>
    %197 = vector.extract %196[0, 0, 0] : f32 from vector<1x1x1xf32>
    %198 = vector.broadcast %197 : f32 to vector<1x1xf32>
    %cst_51 = arith.constant 0.733333349 : f32
    %199 = vector.broadcast %cst_51 : f32 to vector<64x128xf32>
    %200 = arith.cmpf ogt, %43, %199 : vector<64x128xf32>
    %201 = arith.extui %200 : vector<64x128xi1> to vector<64x128xi32>
    %202 = arith.sitofp %201 : vector<64x128xi32> to vector<64x128xf32>
    %203 = vector.shape_cast %202 : vector<64x128xf32> to vector<1x64x128xf32>
    %cst_52 = arith.constant dense<0.000000e+00> : vector<1xf32>
    %204 = vector.multi_reduction <add>, %203, %cst_52 [1, 2] : vector<1x64x128xf32> to vector<1xf32>
    %205 = vector.shape_cast %204 : vector<1xf32> to vector<1x1x1xf32>
    %206 = vector.extract %205[0, 0, 0] : f32 from vector<1x1x1xf32>
    %207 = vector.broadcast %206 : f32 to vector<1x1xf32>
    %cst_53 = arith.constant 0.000000e+00 : f32
    %208 = vector.broadcast %cst_53 : f32 to vector<64x128xf32>
    %209 = arith.select %200, %43, %208 : vector<64x128xi1>, vector<64x128xf32>
    %210 = vector.shape_cast %209 : vector<64x128xf32> to vector<1x64x128xf32>
    %cst_54 = arith.constant dense<0.000000e+00> : vector<1xf32>
    %211 = vector.multi_reduction <add>, %210, %cst_54 [1, 2] : vector<1x64x128xf32> to vector<1xf32>
    %212 = vector.shape_cast %211 : vector<1xf32> to vector<1x1x1xf32>
    %213 = vector.extract %212[0, 0, 0] : f32 from vector<1x1x1xf32>
    %214 = vector.broadcast %213 : f32 to vector<1x1xf32>
    %cst_55 = arith.constant 0.000000e+00 : f32
    %215 = vector.broadcast %cst_55 : f32 to vector<64x128xf32>
    %216 = arith.select %200, %39, %215 : vector<64x128xi1>, vector<64x128xf32>
    %217 = vector.shape_cast %216 : vector<64x128xf32> to vector<1x64x128xf32>
    %cst_56 = arith.constant dense<0.000000e+00> : vector<1xf32>
    %218 = vector.multi_reduction <add>, %217, %cst_56 [1, 2] : vector<1x64x128xf32> to vector<1xf32>
    %219 = vector.shape_cast %218 : vector<1xf32> to vector<1x1x1xf32>
    %220 = vector.extract %219[0, 0, 0] : f32 from vector<1x1x1xf32>
    %221 = vector.broadcast %220 : f32 to vector<1x1xf32>
    %cst_57 = arith.constant 8.000000e-01 : f32
    %222 = vector.broadcast %cst_57 : f32 to vector<64x128xf32>
    %223 = arith.cmpf ogt, %43, %222 : vector<64x128xf32>
    %224 = arith.extui %223 : vector<64x128xi1> to vector<64x128xi32>
    %225 = arith.sitofp %224 : vector<64x128xi32> to vector<64x128xf32>
    %226 = vector.shape_cast %225 : vector<64x128xf32> to vector<1x64x128xf32>
    %cst_58 = arith.constant dense<0.000000e+00> : vector<1xf32>
    %227 = vector.multi_reduction <add>, %226, %cst_58 [1, 2] : vector<1x64x128xf32> to vector<1xf32>
    %228 = vector.shape_cast %227 : vector<1xf32> to vector<1x1x1xf32>
    %229 = vector.extract %228[0, 0, 0] : f32 from vector<1x1x1xf32>
    %230 = vector.broadcast %229 : f32 to vector<1x1xf32>
    %cst_59 = arith.constant 0.000000e+00 : f32
    %231 = vector.broadcast %cst_59 : f32 to vector<64x128xf32>
    %232 = arith.select %223, %43, %231 : vector<64x128xi1>, vector<64x128xf32>
    %233 = vector.shape_cast %232 : vector<64x128xf32> to vector<1x64x128xf32>
    %cst_60 = arith.constant dense<0.000000e+00> : vector<1xf32>
    %234 = vector.multi_reduction <add>, %233, %cst_60 [1, 2] : vector<1x64x128xf32> to vector<1xf32>
    %235 = vector.shape_cast %234 : vector<1xf32> to vector<1x1x1xf32>
    %236 = vector.extract %235[0, 0, 0] : f32 from vector<1x1x1xf32>
    %237 = vector.broadcast %236 : f32 to vector<1x1xf32>
    %cst_61 = arith.constant 0.000000e+00 : f32
    %238 = vector.broadcast %cst_61 : f32 to vector<64x128xf32>
    %239 = arith.select %223, %39, %238 : vector<64x128xi1>, vector<64x128xf32>
    %240 = vector.shape_cast %239 : vector<64x128xf32> to vector<1x64x128xf32>
    %cst_62 = arith.constant dense<0.000000e+00> : vector<1xf32>
    %241 = vector.multi_reduction <add>, %240, %cst_62 [1, 2] : vector<1x64x128xf32> to vector<1xf32>
    %242 = vector.shape_cast %241 : vector<1xf32> to vector<1x1x1xf32>
    %243 = vector.extract %242[0, 0, 0] : f32 from vector<1x1x1xf32>
    %244 = vector.broadcast %243 : f32 to vector<1x1xf32>
    %cst_63 = arith.constant 0.866666674 : f32
    %245 = vector.broadcast %cst_63 : f32 to vector<64x128xf32>
    %246 = arith.cmpf ogt, %43, %245 : vector<64x128xf32>
    %247 = arith.extui %246 : vector<64x128xi1> to vector<64x128xi32>
    %248 = arith.sitofp %247 : vector<64x128xi32> to vector<64x128xf32>
    %249 = vector.shape_cast %248 : vector<64x128xf32> to vector<1x64x128xf32>
    %cst_64 = arith.constant dense<0.000000e+00> : vector<1xf32>
    %250 = vector.multi_reduction <add>, %249, %cst_64 [1, 2] : vector<1x64x128xf32> to vector<1xf32>
    %251 = vector.shape_cast %250 : vector<1xf32> to vector<1x1x1xf32>
    %252 = vector.extract %251[0, 0, 0] : f32 from vector<1x1x1xf32>
    %253 = vector.broadcast %252 : f32 to vector<1x1xf32>
    %cst_65 = arith.constant 0.000000e+00 : f32
    %254 = vector.broadcast %cst_65 : f32 to vector<64x128xf32>
    %255 = arith.select %246, %43, %254 : vector<64x128xi1>, vector<64x128xf32>
    %256 = vector.shape_cast %255 : vector<64x128xf32> to vector<1x64x128xf32>
    %cst_66 = arith.constant dense<0.000000e+00> : vector<1xf32>
    %257 = vector.multi_reduction <add>, %256, %cst_66 [1, 2] : vector<1x64x128xf32> to vector<1xf32>
    %258 = vector.shape_cast %257 : vector<1xf32> to vector<1x1x1xf32>
    %259 = vector.extract %258[0, 0, 0] : f32 from vector<1x1x1xf32>
    %260 = vector.broadcast %259 : f32 to vector<1x1xf32>
    %cst_67 = arith.constant 0.000000e+00 : f32
    %261 = vector.broadcast %cst_67 : f32 to vector<64x128xf32>
    %262 = arith.select %246, %39, %261 : vector<64x128xi1>, vector<64x128xf32>
    %263 = vector.shape_cast %262 : vector<64x128xf32> to vector<1x64x128xf32>
    %cst_68 = arith.constant dense<0.000000e+00> : vector<1xf32>
    %264 = vector.multi_reduction <add>, %263, %cst_68 [1, 2] : vector<1x64x128xf32> to vector<1xf32>
    %265 = vector.shape_cast %264 : vector<1xf32> to vector<1x1x1xf32>
    %266 = vector.extract %265[0, 0, 0] : f32 from vector<1x1x1xf32>
    %267 = vector.broadcast %266 : f32 to vector<1x1xf32>
    %cst_69 = arith.constant 0.933333337 : f32
    %268 = vector.broadcast %cst_69 : f32 to vector<64x128xf32>
    %269 = arith.cmpf ogt, %43, %268 : vector<64x128xf32>
    %270 = arith.extui %269 : vector<64x128xi1> to vector<64x128xi32>
    %271 = arith.sitofp %270 : vector<64x128xi32> to vector<64x128xf32>
    %272 = vector.shape_cast %271 : vector<64x128xf32> to vector<1x64x128xf32>
    %cst_70 = arith.constant dense<0.000000e+00> : vector<1xf32>
    %273 = vector.multi_reduction <add>, %272, %cst_70 [1, 2] : vector<1x64x128xf32> to vector<1xf32>
    %274 = vector.shape_cast %273 : vector<1xf32> to vector<1x1x1xf32>
    %275 = vector.extract %274[0, 0, 0] : f32 from vector<1x1x1xf32>
    %276 = vector.broadcast %275 : f32 to vector<1x1xf32>
    %cst_71 = arith.constant 0.000000e+00 : f32
    %277 = vector.broadcast %cst_71 : f32 to vector<64x128xf32>
    %278 = arith.select %269, %43, %277 : vector<64x128xi1>, vector<64x128xf32>
    %279 = vector.shape_cast %278 : vector<64x128xf32> to vector<1x64x128xf32>
    %cst_72 = arith.constant dense<0.000000e+00> : vector<1xf32>
    %280 = vector.multi_reduction <add>, %279, %cst_72 [1, 2] : vector<1x64x128xf32> to vector<1xf32>
    %281 = vector.shape_cast %280 : vector<1xf32> to vector<1x1x1xf32>
    %282 = vector.extract %281[0, 0, 0] : f32 from vector<1x1x1xf32>
    %283 = vector.broadcast %282 : f32 to vector<1x1xf32>
    %cst_73 = arith.constant 0.000000e+00 : f32
    %284 = vector.broadcast %cst_73 : f32 to vector<64x128xf32>
    %285 = arith.select %269, %39, %284 : vector<64x128xi1>, vector<64x128xf32>
    %286 = vector.shape_cast %285 : vector<64x128xf32> to vector<1x64x128xf32>
    %cst_74 = arith.constant dense<0.000000e+00> : vector<1xf32>
    %287 = vector.multi_reduction <add>, %286, %cst_74 [1, 2] : vector<1x64x128xf32> to vector<1xf32>
    %288 = vector.shape_cast %287 : vector<1xf32> to vector<1x1x1xf32>
    %289 = vector.extract %288[0, 0, 0] : f32 from vector<1x1x1xf32>
    %290 = vector.broadcast %289 : f32 to vector<1x1xf32>
    %291 = tpu.concatenate %50, %69, %92, %115, %138, %161, %184, %207, %230, %253, %276 in 1 : vector<1x1xf32>, vector<1x1xf32>, vector<1x1xf32>, vector<1x1xf32>, vector<1x1xf32>, vector<1x1xf32>, vector<1x1xf32>, vector<1x1xf32>, vector<1x1xf32>, vector<1x1xf32>, vector<1x1xf32> -> vector<1x11xf32>
    %292 = tpu.concatenate %55, %76, %99, %122, %145, %168, %191, %214, %237, %260, %283 in 1 : vector<1x1xf32>, vector<1x1xf32>, vector<1x1xf32>, vector<1x1xf32>, vector<1x1xf32>, vector<1x1xf32>, vector<1x1xf32>, vector<1x1xf32>, vector<1x1xf32>, vector<1x1xf32>, vector<1x1xf32> -> vector<1x11xf32>
    %293 = tpu.concatenate %60, %83, %106, %129, %152, %175, %198, %221, %244, %267, %290 in 1 : vector<1x1xf32>, vector<1x1xf32>, vector<1x1xf32>, vector<1x1xf32>, vector<1x1xf32>, vector<1x1xf32>, vector<1x1xf32>, vector<1x1xf32>, vector<1x1xf32>, vector<1x1xf32>, vector<1x1xf32> -> vector<1x11xf32>
    %294 = tpu.concatenate %291, %292, %293 in 0 : vector<1x11xf32>, vector<1x11xf32>, vector<1x11xf32> -> vector<3x11xf32>
    %c0_75 = arith.constant 0 : index
    %c0_76 = arith.constant 0 : index
    %c0_77 = arith.constant 0 : index
    %295 = vector.load %arg4[%c0_75, %c0_76, %c0_77] : memref<1x3x11xf32, #tpu.memory_space<vmem>>, vector<1x3x11xf32>
    %296 = vector.shape_cast %295 : vector<1x3x11xf32> to vector<3x11xf32>
    %297 = vector.shape_cast %294 : vector<3x11xf32> to vector<1x3x11xf32>
    tpu.vector_store %arg4[%c0_75, %c0_76, %c0_77], %297 {strides = array<i32>} : memref<1x3x11xf32, #tpu.memory_space<vmem>>, vector<1x3x11xf32>,
    return
  }
  func.func @transform_0(%arg0: i32) -> i32 {
    %c0_i32 = arith.constant 0 : i32
    %c0_i32_0 = arith.constant 0 : i32
    return %c0_i32 : i32
  }
  func.func @transform_1(%arg0: i32) -> (i32, i32, i32) {
    %c0_i32 = arith.constant 0 : i32
    %c0_i32_0 = arith.constant 0 : i32
    %c0_i32_1 = arith.constant 0 : i32
    return %c0_i32, %arg0, %c0_i32_0 : i32, i32, i32
  }
  func.func @transform_2(%arg0: i32) -> (i32, i32) {
    %c0_i32 = arith.constant 0 : i32
    %c0_i32_0 = arith.constant 0 : i32
    return %arg0, %c0_i32 : i32, i32
  }
  func.func @transform_3(%arg0: i32) -> (i32, i32, i32) {
    %c0_i32 = arith.constant 0 : i32
    %c0_i32_0 = arith.constant 0 : i32
    %c0_i32_1 = arith.constant 0 : i32
    return %arg0, %c0_i32, %c0_i32_0 : i32, i32, i32
  }
}

</mosaic_0001>

<bundles_post_ra>
// kernel: tpu_custom_call.1
= control target key start
LH: loop header
LB: loop body
LE: loop exit
PB: predicated region body
PF: predicated region fallthrough
CT: control target
= control target key end

     0   :  { %s3516_s0 = inlined_call_operand.<no memory space> [shape: f32[1], index: 0, kind: input, shape index: {}]   ;;  %s3517_s1 = inlined_call_operand.hbm [shape: f32[3,128,128], index: 1, kind: input, shape index: {}]   ;;  %s3518_s2 = inlined_call_operand.hbm [shape: s8[128,128], index: 2, kind: input, shape index: {}]   ;;  %s3519_s3 = inlined_call_operand.vmem [shape: f32[2,3,11], index: 3, kind: output, shape index: {}]  }
   0x1   :  { %8 = sst [smem:[#allocation2]] %s3516_s0 }
   0x2   :  { %9 = vsyncpa [#allocation4], 0 }
   0x3   :  { %11 = vsyncpa [#allocation4 + $0x1], 0 }
   0x4   :  { %12 = vsyncpa [#allocation6], 0 }
   0x5   :  { %14 = vsyncpa [#allocation6 + $0x1], 0  ;;  %s2057_s14 = smov 0   ;;  %s2059_s15 = smov 0  }
   0x6   :  { %s2061_s16 = smov 0   ;;  %s2063_s17 = smov 0  }
   0x7 LB: > { %s2076_s0 = sadd.s32 4294967295, %s2022_s17   ;;  %s2079_s18 = sadd.s32 1, %s2022_s17   ;;  %s2022_s17 = sphi %s2063_s17, %s3565_s17   ;;  %s2018_s16 = sphi %s2061_s16, %s3564_s16   ;;  %s2014_s15 = sphi %s2059_s15, %s3563_s15   ;;  %s2010_s14 = sphi %s2057_s14, %s3562_s14  }
   0x8   : > { %s45_s19 = ssub.s32 %s2022_s17, %s2079_s18  ;;  %s48_s20 = sadd.s32 1, %s2018_s16 }
   0x9   : > { %p46_p0 = scmp.eq.s32.totalorder %s45_s19, 0  ;;  %p55_p1 = scmp.ne.s32.totalorder %s2018_s16, %s2014_s15 }
   0xa   : > { %p56_p2 = scmp.eq.s32.totalorder %s2022_s17, 0  ;;  %p61_p3 = scmp.ne.s32.totalorder %s2014_s15, %s2010_s14 }
   0xb   : > { %s2089_s21 = scalar_select %p46_p0, %s2018_s16, %s48_s20  }
   0xc   : > { %p2091_p4 = por %p56_p2, %p55_p1  ;;  %p62_p5 = scmp.eq.s32.totalorder %s2076_s0, 0 }
   0xd   : > { %p1641_p7 = scmp.ge.s32.totalorder %s2022_s17, 2 }
   0xe   : > { %p2096_p6 = por %p62_p5, %p61_p3 }
   0xf   : > { %136 = sbr.rel (%p1641_p7) target bundleno = 60 (0x3c), region = 20 }
  0x16   : > { %s2102_s24 = sand.u32 1, %s2018_s16   ;;  %s1766_s26 = sshll.u32 %s2022_s17, 10 }
  0x17   : > { %s1768_s25 = smul.u32 192, %s2102_s24  ;;  %s2024_s27 = smov 2048  }
  0x18   : > { %1839 = sst [smem:[#allocation8]] (%p2091_p4), %s2024_s27  ;;  %s2025_s5 = smov 1024  }
  0x19   : > { %s1838_s28 = scalar_select %p2091_p4, [#allocation0], [#allocation9] }
  0x1a   : > { %s144_s30 = scalar_lea.vmem [#allocation3], %s1768_s25  ;;  %1840 = sst [smem:[#allocation8 + $0x1]] (%p2091_p4), %s2025_s5 }
  0x1b   : > { %s155_s29 = sld [smem:[%s1838_s28]]   ;;  %s163_s4 = sshll.u32 %s144_s30, 4  ;;  %s164_s4 = int_to_ptr.vmem [resolvable:$true] %s163_s4 }
  0x1c   : > { %s2026_s6 = smov 8   ;;  %s150_s9 = scalar_lea.hbm %s3517_s1, %s1766_s26 }
  0x1d   : > { %1841 = sst [smem:[#allocation8 + $0x2]] (%p2091_p4), %s2026_s6  ;;  %s2027_s10 = smov 128  }
  0x1e   : > { %1842 = sst [smem:[#allocation8 + $0x3]] (%p2091_p4), %s2027_s10  ;;  %s141_s13 = scalar_lea.sflag [#allocation4], %s2102_s24 }
  0x1f   : > { %1843 = sst [smem:[#allocation8 + $0x4]] (%p2091_p4), %s2027_s10  ;;  %s2028_s14 = smov [#allocation7]  }
  0x20   : > { %1844 = sst [smem:[#allocation8 + $0x5]] (%p2091_p4), %s2026_s6  ;;  %s1646_s19 = sshll.u32 %s2102_s24, 4 }
  0x21   : > { %s1644_s11 = sshll.u32 %s155_s29, 26  ;;  %s1767_s20 = sshll.u32 %s2022_s17, 8 }
  0x22   : > { %s1645_s12 = sadd.s32 134217728, %s1644_s11  ;;  %s2131_s27 = scalar_lea.hbm %s3518_s2, %s1767_s20 }
  0x23   : > { %1845 = dma.general (%p2091_p4), %s150_s9, 3072, %s164_s4, %s141_s13, %s2028_s14, [#allocation8], %s1645_s12, 0  }
  0x24   : > { %s190_s28 = scalar_lea.vmem [#allocation5], %s1646_s19  ;;  %s187_s30 = scalar_lea.sflag [#allocation6], %s2102_s24 }
  0x25   : > { %s197_s29 = sshll.u32 %s190_s28, 4  ;;  %s1956_s4 = scalar_lea.hbm %s2131_s27, 256  ;;  %s2133_s29 = int_to_ptr.vmem [resolvable:$true] %s197_s29 }
  0x26   : > { %p1957_p8 = scmp.ne.s32.totalorder %s2131_s27, %s1956_s4  ;;  %s1960_s7 = scalar_lea.hbm %s3518_s2, 512 }
  0x27   : > { %p1961_p11 = scmp.lt.u32.totalorder %s2131_s27, %s3518_s2  ;;  %p1962_p12 = scmp.lt.u32.totalorder %s1960_s7, %s1956_s4 }
  0x28   : > { %p1958_p9 = pnand %p1957_p8, %p2091_p4  ;;  %p1964_p0 = scmp.lt.u32.totalorder %s1956_s4, %s2131_s27 }
  0x29   : > { %p1963_p13 = por %p1962_p12, %p1961_p11 }
  0x2a   : > { %p1959_p10 = pneg %p1958_p9 }
  0x2b   : > { %p1965_p1 = por %p1964_p0, %p1963_p13 }
  0x2d   : > { %p1966_p2 = pnand %p1965_p1, %p1959_p10 }
  0x2f   : > { %1969 = shalt.err (!%p1966_p2)
}
  0x30   : > { %s1970_s10 = scalar_lea.vmem %s2133_s29, 256  ;;  %s2029_s11 = smov [#allocation5]  }
  0x31   : > { %p1971_p3 = scmp.ne.s32.totalorder %s2133_s29, %s1970_s10  ;;  %s1974_s12 = sshll.u32 %s2029_s11, 4  ;;  %s1975_s12 = int_to_ptr.vmem [resolvable:$false] %s1974_s12 }
  0x32   : > { %s1976_s13 = scalar_lea.vmem %s1975_s12, 512  ;;  %p1977_p8 = scmp.lt.s32.totalorder %s2133_s29, %s1975_s12 }
  0x33   : > { %p1972_p5 = pnand %p1971_p3, %p2091_p4  ;;  %p1978_p9 = scmp.lt.s32.totalorder %s1976_s13, %s1970_s10 }
  0x35   : > { %p1973_p7 = pneg %p1972_p5  ;;  %p1979_p11 = por %p1978_p9, %p1977_p8 }
  0x37   : > { %p1980_p12 = pnand %p1979_p11, %p1973_p7 }
  0x39   : > { %1983 = shalt.err (!%p1980_p12)
}
  0x3a   : > { %s2030_s14 = smov 128   ;;  %s2031_s19 = smov 8  }
  0x3b   : > { %1846 = dma.hbm_to_vmem [thread:$0]  (%p2091_p4), %s2131_s27, 256, %s2133_s29, %s187_s30, %s2030_s14, %s2030_s14, %s2031_s19  }
  0x3c PF: > { %p1649_p10 = scmp.ge.s32.totalorder %s2022_s17, 1  ;;  %p205_p13 = scmp.lt.s32.totalorder %s2022_s17, 3 }
  0x3e   : > { %p206_p0 = pnand %p1649_p10, %p205_p13 }
  0x3f   : > { %s211_s20 = sand.u32 (!%p206_p0), 1, %s2014_s15  }
  0x40   : > { %209 = sbr.rel (%p206_p0) target bundleno = 568 (0x238), region = 32  ;;  %s212_s26 = scalar_lea.sflag (!%p206_p0), [#allocation4], %s211_s20 }
  0x41   : > { %s1769_s25 = smul.u32 (!%p206_p0), 192, %s211_s20 }
  0x43   : > { %s2162_s28 = scalar_lea.vmem (!%p206_p0), [#allocation3], %s1769_s25 }
  0x47   : > { %2001 = dma.done.wait (%p2096_p6), %s212_s26, 3072  }
  0x48   : > { %2003 = vsyncadd (%p2096_p6), %s212_s26, 4294964224  ;;  %s1650_s22 = sshll.u32 %s211_s20, 4  ;;  %s221_s24 = scalar_lea.sflag [#allocation6], %s211_s20 }
  0x49   : > { %s224_s27 = scalar_lea.vmem [#allocation5], %s1650_s22 }
  0x4a   : > { %2005 = dma.done.wait (%p2096_p6), %s221_s24, 256  }
  0x4b   : > { %2007 = vsyncadd (%p2096_p6), %s221_s24, 4294967040  ;;  %s257_s17 = sld [smem:[#allocation2]]  ;;  %v2172_v1 = vld [vmem:[%s224_s27] sm:$0xff]  ;;  %v2177_v5 = vld [vmem:[%s224_s27 + $0x8] sm:$0xff]  ;;  %v2032_v13 = vmov 0.0   ;;  %v3537_v18 = vmov 0 }
  0x4c   : > { %v474_v2 = vunpack.c.0.s8 %v2172_v1  ;;  %v475_v3 = vunpack.c.1.s8 %v2172_v1  ;;  %v476_v4 = vunpack.c.2.s8 %v2172_v1  ;;  %v477_v7 = vunpack.c.3.s8 %v2172_v1  ;;  %v261_v36 = vld [vmem:[%s2162_s28] sm:$0xff]  ;;  %v262_v37 = vld [vmem:[%s2162_s28 + $0x8] sm:$0xff]  ;;  %v263_v38 = vld [vmem:[%s2162_s28 + $0x10] sm:$0xff]  ;;  %p253_p4 = scmp.lt.s32.totalorder %s2076_s0, 1 }
  0x4d   : > { %v478_v11 = vunpack.c.0.s8 %v2177_v5  ;;  %v3526_v17 = vunpack.c.1.s8 %v2177_v5  ;;  %v3525_v21 = vunpack.c.2.s8 %v2177_v5  ;;  %v3539_v22 = vmov 0  ;;  %v264_v39 = vld [vmem:[%s2162_s28 + $0x18] sm:$0xff]  ;;  %v265_v40 = vld [vmem:[%s2162_s28 + $0x20] sm:$0xff]  ;;  %v266_v41 = vld [vmem:[%s2162_s28 + $0x28] sm:$0xff] }
  0x4e   : > { %vm2182_vm0 = vcmp.ge.s32.totalorder %v474_v2, 0  ;;  %vm2188_vm1 = vcmp.ge.s32.totalorder %v475_v3, 0  ;;  %vm2194_vm2 = vcmp.ge.s32.totalorder %v476_v4, 0  ;;  %vm2201_vm3 = vcmp.ge.s32.totalorder %v477_v7, 0  ;;  %v267_v42 = vld [vmem:[%s2162_s28 + $0x30] sm:$0xff]  ;;  %v268_v43 = vld [vmem:[%s2162_s28 + $0x38] sm:$0xff] }
  0x4f   : > { %v1676_v14 = vsel %vm2182_vm0, 1.0, %v2032_v13  ;;  %v1677_v15 = vsel %vm2188_vm1, 1.0, %v2032_v13  ;;  %v1678_v16 = vsel %vm2194_vm2, 1.0, %v2032_v13  ;;  %vm2217_vm4 = vcmp.ge.s32.totalorder %v478_v11, 0  ;;  %v1652_v44 = vld [vmem:[%s2162_s28 + $0x40] sm:$0xff]  ;;  %v1653_v45 = vld [vmem:[%s2162_s28 + $0x48] sm:$0xff] }
  0x50   : > { %v3538_v18 = vsel %vm2217_vm4, 4294967295, %v3537_v18  ;;  %v538_v19 = vadd.f32 %v1677_v15, %v1676_v14  ;;  %v1679_v20 = vsel %vm2201_vm3, 1.0, %v2032_v13  ;;  %vm2227_vm5 = vcmp.ge.s32.totalorder %v3526_v17, 0  ;;  %v1654_v46 = vld [vmem:[%s2162_s28 + $0x50] sm:$0xff]  ;;  %v1655_v47 = vld [vmem:[%s2162_s28 + $0x58] sm:$0xff]  ;;  %v1656_v49 = vld [vmem:[%s2162_s28 + $0x60] sm:$0xff] }
  0x51   : > { %v258_v0 = vstv %s257_s17  ;;  %v3540_v22 = vsel %vm2227_vm5, 4294967295, %v3539_v22  ;;  %v1680_v24 = vsel %vm2217_vm4, 1.0, %v2032_v13  ;;  %vm2236_vm6 = vcmp.ge.s32.totalorder %v3525_v21, 0  ;;  %v1657_v50 = vld [vmem:[%s2162_s28 + $0x68] sm:$0xff]  ;;  %v1658_v51 = vld [vmem:[%s2162_s28 + $0x70] sm:$0xff]  ;;  %v1659_v56 = vld [vmem:[%s2162_s28 + $0x78] sm:$0xff] }
  0x52   : > { %1890 = vrcp.f32 %v258_v0  ;;  %v539_v23 = vadd.f32 %v1678_v16, %v538_v19  ;;  %v3541_v25 = vmov 0  ;;  %v1681_v27 = vsel %vm2227_vm5, 1.0, %v2032_v13  ;;  %v1660_v57 = vld [vmem:[%s2162_s28 + $0x80] sm:$0xff]  ;;  %v1661_v58 = vld [vmem:[%s2162_s28 + $0x88] sm:$0xff]  ;;  %v1662_v63 = vld [vmem:[%s2162_s28 + $0x90] sm:$0xff]  ;;  %s3567_s0 = smov (!%p253_p4, %s2076_s0), 1 }
  0x53   : > { %v3542_v25 = vsel %vm2236_vm6, 4294967295, %v3541_v25  ;;  %v3524_v28 = vunpack.c.3.s8 %v2177_v5  ;;  %v1682_v30 = vsel %vm2236_vm6, 1.0, %v2032_v13  ;;  %v3543_v31 = vmov 0  ;;  %v1663_v0 = vld [vmem:[%s2162_s28 + $0x98] sm:$0xff] }
  0x54   : > { %v540_v26 = vadd.f32 %v1679_v20, %v539_v23  ;;  %v1665_v20 = vld [vmem:[%s2162_s28 + $0xa8] sm:$0xff]  ;;  %v1666_v23 = vld [vmem:[%s2162_s28 + $0xb0] sm:$0xff] }
  0x55   : > { %vm2249_vm7 = vcmp.ge.s32.totalorder %v3524_v28, 0 }
  0x56   : > { %v541_v29 = vadd.f32 %v1680_v24, %v540_v26  ;;  %v3544_v31 = vsel %vm2249_vm7, 4294967295, %v3543_v31  ;;  %v1683_v33 = vsel %vm2249_vm7, 1.0, %v2032_v13  ;;  %v1667_v24 = vld [vmem:[%s2162_s28 + $0xb8] sm:$0xff] }
  0x58   : > { %v542_v32 = vadd.f32 %v1681_v27, %v541_v29 }
  0x5a   : > { %v543_v34 = vadd.f32 %v1682_v30, %v542_v32 }
  0x5c   : > { %v1891_v6 = vpop.eup %1890  ;;  %v544_v35 = vadd.f32 %v1683_v33, %v543_v34 }
  0x5d   : > { %1770 = vpush %v1891_v6  ;;  %v1664_v6 = vld [vmem:[%s2162_s28 + $0xa0] sm:$0xff] }
  0x5e   : > { %545 = vadd.xlane.f32.xlu0 %v544_v35 }
  0x8e   : > { %s1771_s23 = spop %1770 }
  0x8f   : > { %v269_v48 = vstv %s1771_s23 }
  0x90   : > { %v2271_v52 = vmul.f32 %v269_v48, %v261_v36  ;;  %v2273_v53 = vmul.f32 %v269_v48, %v262_v37  ;;  %v2275_v54 = vmul.f32 %v269_v48, %v263_v38  ;;  %v2277_v55 = vmul.f32 %v269_v48, %v264_v39 }
  0x91   : > { %v2282_v59 = vmul.f32 %v269_v48, %v265_v40  ;;  %v2284_v60 = vmul.f32 %v269_v48, %v266_v41  ;;  %v2286_v61 = vmul.f32 %v269_v48, %v267_v42  ;;  %v2288_v62 = vmul.f32 %v269_v48, %v268_v43 }
  0x92   : > { %v2293_v14 = vmul.f32 %v1652_v44, %v269_v48  ;;  %v2295_v15 = vmul.f32 %v1653_v45, %v269_v48  ;;  %v2297_v16 = vmul.f32 %v1654_v46, %v269_v48  ;;  %v2299_v19 = vmul.f32 %v1655_v47, %v269_v48 }
  0x93   : > { %v2304_v26 = vmul.f32 %v1656_v49, %v269_v48  ;;  %v2306_v27 = vmul.f32 %v1657_v50, %v269_v48  ;;  %v2308_v29 = vmul.f32 %v1658_v51, %v269_v48  ;;  %v2310_v30 = vmul.f32 %v1659_v56, %v269_v48 }
  0x94   : > { %v2312_v32 = vmul.f32 %v1660_v57, %v269_v48  ;;  %v2314_v33 = vmul.f32 %v1661_v58, %v269_v48  ;;  %v2316_v34 = vmul.f32 %v1662_v63, %v269_v48  ;;  %v2318_v35 = vmul.f32 %v1663_v0, %v269_v48 }
  0x95   : > { %v2320_v36 = vmul.f32 %v1664_v6, %v269_v48  ;;  %v2322_v37 = vmul.f32 %v1665_v20, %v269_v48  ;;  %v2324_v38 = vmul.f32 %v1666_v23, %v269_v48  ;;  %v2326_v39 = vmul.f32 %v1667_v24, %v269_v48 }
  0x96   : > { %v312_v40 = vmax.f32 %v2271_v52, %v2293_v14  ;;  %v313_v41 = vmax.f32 %v2273_v53, %v2295_v15  ;;  %v314_v42 = vmax.f32 %v2275_v54, %v2297_v16  ;;  %v315_v43 = vmax.f32 %v2277_v55, %v2299_v19 }
  0x97   : > { %v316_v44 = vmax.f32 %v2282_v59, %v2304_v26  ;;  %v317_v45 = vmax.f32 %v2284_v60, %v2306_v27  ;;  %v318_v46 = vmax.f32 %v2286_v61, %v2308_v29  ;;  %v319_v47 = vmax.f32 %v2288_v62, %v2310_v30 }
  0x98   : > { %v2345_v48 = vmax.f32 %v312_v40, %v2312_v32  ;;  %v2348_v49 = vmax.f32 %v313_v41, %v2314_v33  ;;  %v2351_v50 = vmax.f32 %v314_v42, %v2316_v34  ;;  %v2354_v51 = vmax.f32 %v315_v43, %v2318_v35 }
  0x99   : > { %v2357_v56 = vmax.f32 %v316_v44, %v2320_v36  ;;  %v2360_v57 = vmax.f32 %v317_v45, %v2322_v37  ;;  %v2363_v58 = vmax.f32 %v318_v46, %v2324_v38  ;;  %v2366_v63 = vmax.f32 %v319_v47, %v2326_v39 }
  0x9a   : > { %vm424_vm8 = vcmp.eq.f32.partialorder %v2312_v32, %v2345_v48  ;;  %vm425_vm9 = vcmp.eq.f32.partialorder %v2314_v33, %v2348_v49  ;;  %vm426_vm10 = vcmp.eq.f32.partialorder %v2316_v34, %v2351_v50  ;;  %vm427_vm11 = vcmp.eq.f32.partialorder %v2318_v35, %v2354_v51 }
  0x9b   : > { %vm428_vm12 = vcmp.eq.f32.partialorder %v2320_v36, %v2357_v56  ;;  %vm429_vm13 = vcmp.eq.f32.partialorder %v2322_v37, %v2360_v57  ;;  %vm430_vm14 = vcmp.eq.f32.partialorder %v2324_v38, %v2363_v58  ;;  %vm431_vm15 = vcmp.eq.f32.partialorder %v2326_v39, %v2366_v63 }
  0x9c   : > { %v2033_v0 = vmov 0   ;;  %vm440_vm7 = vcmp.eq.f32.partialorder %v2293_v14, %v2345_v48  ;;  %vm441_vm6 = vcmp.eq.f32.partialorder %v2295_v15, %v2348_v49  ;;  %vm442_vm5 = vcmp.eq.f32.partialorder %v2297_v16, %v2351_v50 }
  0x9d   : > { %v432_v6 = vsel %vm424_vm8, 2, %v2033_v0  ;;  %v433_v20 = vsel %vm425_vm9, 2, %v2033_v0  ;;  %v434_v23 = vsel %vm426_vm10, 2, %v2033_v0  ;;  %v435_v24 = vsel %vm427_vm11, 2, %v2033_v0 }
  0x9e   : > { %v436_v40 = vsel %vm428_vm12, 2, %v2033_v0  ;;  %v437_v41 = vsel %vm429_vm13, 2, %v2033_v0  ;;  %v438_v42 = vsel %vm430_vm14, 2, %v2033_v0  ;;  %v439_v43 = vsel %vm431_vm15, 2, %v2033_v0 }
  0x9f   : > { %vm443_vm4 = vcmp.eq.f32.partialorder %v2299_v19, %v2354_v51  ;;  %vm444_vm8 = vcmp.eq.f32.partialorder %v2304_v26, %v2357_v56  ;;  %vm445_vm9 = vcmp.eq.f32.partialorder %v2306_v27, %v2360_v57  ;;  %vm446_vm10 = vcmp.eq.f32.partialorder %v2308_v29, %v2363_v58 }
  0xa0   : > { %vm447_vm11 = vcmp.eq.f32.partialorder %v2310_v30, %v2366_v63  ;;  %v448_v44 = vsel %vm440_vm7, 1, %v432_v6  ;;  %v449_v45 = vsel %vm441_vm6, 1, %v433_v20  ;;  %v450_v46 = vsel %vm442_vm5, 1, %v434_v23 }
  0xa1   : > { %v451_v47 = vsel %vm443_vm4, 1, %v435_v24  ;;  %v452_v0 = vsel %vm444_vm8, 1, %v436_v40  ;;  %v453_v28 = vsel %vm445_vm9, 1, %v437_v41  ;;  %v454_v21 = vsel %vm446_vm10, 1, %v438_v42 }
  0xa2   : > { %v455_v17 = vsel %vm447_vm11, 1, %v439_v43  ;;  %vm456_vm12 = vcmp.eq.f32.partialorder %v2271_v52, %v2345_v48  ;;  %vm457_vm13 = vcmp.eq.f32.partialorder %v2273_v53, %v2348_v49  ;;  %vm458_vm14 = vcmp.eq.f32.partialorder %v2275_v54, %v2351_v50 }
  0xa3   : > { %vm459_vm15 = vcmp.eq.f32.partialorder %v2277_v55, %v2354_v51  ;;  %vm460_vm5 = vcmp.eq.f32.partialorder %v2282_v59, %v2357_v56  ;;  %vm461_vm4 = vcmp.eq.f32.partialorder %v2284_v60, %v2360_v57  ;;  %vm462_vm6 = vcmp.eq.f32.partialorder %v2286_v61, %v2363_v58 }
  0xa4   : > { %v464_v6 = vsel %vm456_vm12, 0, %v448_v44  ;;  %v465_v20 = vsel %vm457_vm13, 0, %v449_v45  ;;  %vm463_vm7 = vcmp.eq.f32.partialorder %v2288_v62, %v2366_v63  ;;  %v466_v23 = vsel %vm458_vm14, 0, %v450_v46 }
  0xa5   : > { %v467_v24 = vsel %vm459_vm15, 0, %v451_v47  ;;  %v468_v40 = vsel %vm460_vm5, 0, %v452_v0  ;;  %v469_v41 = vsel %vm461_vm4, 0, %v453_v28  ;;  %v470_v42 = vsel %vm462_vm6, 0, %v454_v21 }
  0xa6   : > { %vm482_vm8 = vcmp.eq.s32.totalorder %v464_v6, %v474_v2  ;;  %vm483_vm9 = vcmp.eq.s32.totalorder %v465_v20, %v475_v3  ;;  %v471_v43 = vsel %vm463_vm7, 0, %v455_v17  ;;  %vm484_vm10 = vcmp.eq.s32.totalorder %v466_v23, %v476_v4 }
  0xa7   : > { %v2423_v44 = vsel %vm482_vm8, 1.0, %v2032_v13  ;;  %v2426_v45 = vsel %vm483_vm9, 1.0, %v2032_v13  ;;  %vm2430_vm11 = vcmp.eq.s32.totalorder %v467_v24, %v477_v7  ;;  %vm2436_vm12 = vcmp.eq.s32.totalorder %v468_v40, %v478_v11 }
  0xa8   : > { %v3549_v3 = vunpack.c.1.s8 %v2177_v5  ;;  %v3552_v17 = vunpack.c.2.s8 %v2177_v5  ;;  %v3555_v7 = vunpack.c.3.s8 %v2177_v5  ;;  %v572_v11 = vadd.f32 %v2426_v45, %v2423_v44 }
  0xa9   : > { %v328_v46 = vsub.f32 %v2271_v52, %v2345_v48  ;;  %v329_v47 = vsub.f32 %v2273_v53, %v2348_v49  ;;  %v330_v0 = vsub.f32 %v2275_v54, %v2351_v50  ;;  %v2467_v6 = vsel %vm484_vm10, 1.0, %v2032_v13 }
  0xaa   : > { %vm2442_vm13 = vcmp.eq.s32.totalorder %v469_v41, %v3549_v3  ;;  %vm2448_vm14 = vcmp.eq.s32.totalorder %v470_v42, %v3552_v17  ;;  %vm2454_vm15 = vcmp.eq.s32.totalorder %v471_v43, %v3555_v7  ;;  %v331_v5 = vsub.f32 %v2277_v55, %v2354_v51 }
  0xab   : > { %v332_v20 = vsub.f32 %v2282_v59, %v2357_v56  ;;  %v333_v23 = vsub.f32 %v2284_v60, %v2360_v57  ;;  %v573_v52 = vadd.f32 %v2467_v6, %v572_v11  ;;  %v334_v53 = vsub.f32 %v2286_v61, %v2363_v58 }
  0xac   : > { %v336_v24 = vmul.f32 1.442695, %v328_v46  ;;  %v338_v40 = vmul.f32 1.442695, %v329_v47  ;;  %v2481_v54 = vsel %vm2430_vm11, 1.0, %v2032_v13  ;;  %v335_v55 = vsub.f32 %v2288_v62, %v2366_v63 }
  0xad   : > { %v340_v41 = vmul.f32 1.442695, %v330_v0  ;;  %v342_v59 = vmul.f32 1.442695, %v331_v5  ;;  %v574_v42 = vadd.f32 %v2481_v54, %v573_v52  ;;  %v344_v60 = vmul.f32 1.442695, %v332_v20 }
  0xae   : > { %1892 = vpow2.f32 %v336_v24  ;;  %v352_v43 = vsub.f32 %v2293_v14, %v2345_v48  ;;  %v2491_v61 = vsel %vm2436_vm12, 1.0, %v2032_v13  ;;  %v346_v21 = vmul.f32 1.442695, %v333_v23 }
  0xaf   : > { %1894 = vpow2.f32 %v338_v40  ;;  %v353_v3 = vsub.f32 %v2295_v15, %v2348_v49  ;;  %v575_v62 = vadd.f32 %v2491_v61, %v574_v42  ;;  %v348_v17 = vmul.f32 1.442695, %v334_v53 }
  0xb0   : > { %1896 = vpow2.f32 %v340_v41  ;;  %v354_v7 = vsub.f32 %v2297_v16, %v2351_v50  ;;  %v2501_v14 = vsel %vm2442_vm13, 1.0, %v2032_v13  ;;  %v350_v2 = vmul.f32 1.442695, %v335_v55 }
  0xb1   : > { %1898 = vpow2.f32 %v342_v59  ;;  %v355_v11 = vsub.f32 %v2299_v19, %v2354_v51  ;;  %v576_v46 = vadd.f32 %v2501_v14, %v575_v62  ;;  %v356_v15 = vsub.f32 %v2304_v26, %v2357_v56 }
  0xb2   : > { %1900 = vpow2.f32 %v344_v60  ;;  %v360_v47 = vmul.f32 1.442695, %v352_v43  ;;  %v2511_v16 = vsel %vm2448_vm14, 1.0, %v2032_v13  ;;  %v357_v4 = vsub.f32 %v2306_v27, %v2360_v57 }
  0xb3   : > { %1902 = vpow2.f32 %v346_v21  ;;  %v362_v0 = vmul.f32 1.442695, %v353_v3  ;;  %v577_v5 = vadd.f32 %v2511_v16, %v576_v46  ;;  %v358_v19 = vsub.f32 %v2308_v29, %v2363_v58 }
  0xb4   : > { %1904 = vpow2.f32 %v348_v17  ;;  %v364_v20 = vmul.f32 1.442695, %v354_v7  ;;  %v2521_v26 = vsel %vm2454_vm15, 1.0, %v2032_v13  ;;  %v359_v1 = vsub.f32 %v2310_v30, %v2366_v63 }
  0xb5   : > { %1906 = vpow2.f32 %v350_v2  ;;  %v366_v23 = vmul.f32 1.442695, %v355_v11  ;;  %v578_v27 = vadd.f32 %v2521_v26, %v577_v5  ;;  %v368_v52 = vmul.f32 1.442695, %v356_v15 }
  0xb6   : > { %1908 = vpow2.f32 %v360_v47  ;;  %v384_v53 = vsub.f32 %v2312_v32, %v2345_v48  ;;  %v370_v29 = vmul.f32 1.442695, %v357_v4  ;;  %v385_v24 = vsub.f32 %v2314_v33, %v2348_v49 }
  0xb7   : > { %1910 = vpow2.f32 %v362_v0  ;;  %579 = vadd.xlane.f32.xlu1 %v578_v27  ;;  %v372_v40 = vmul.f32 1.442695, %v358_v19  ;;  %v386_v30 = vsub.f32 %v2316_v34, %v2351_v50  ;;  %v374_v41 = vmul.f32 1.442695, %v359_v1 }
  0xb8   : > { %v1893_v28 = vpop.eup %1892  ;;  %1912 = vpow2.f32 %v364_v20  ;;  %v387_v59 = vsub.f32 %v2318_v35, %v2354_v51  ;;  %v388_v32 = vsub.f32 %v2320_v36, %v2357_v56  ;;  %v392_v48 = vmul.f32 1.442695, %v384_v53 }
  0xb9   : > { %v1895_v55 = vpop.eup %1894  ;;  %1914 = vpow2.f32 %v366_v23  ;;  %v389_v49 = vsub.f32 %v2322_v37, %v2360_v57  ;;  %v394_v60 = vmul.f32 1.442695, %v385_v24  ;;  %v390_v34 = vsub.f32 %v2324_v38, %v2363_v58 }
  0xba   : > { %v1897_v42 = vpop.eup %1896  ;;  %1916 = vpow2.f32 %v368_v52  ;;  %v396_v50 = vmul.f32 1.442695, %v386_v30  ;;  %v391_v35 = vsub.f32 %v2326_v39, %v2366_v63  ;;  %v398_v51 = vmul.f32 1.442695, %v387_v59 }
  0xbb   : > { %v1899_v33 = vpop.eup %1898  ;;  %1918 = vpow2.f32 %v370_v29  ;;  %v400_v56 = vmul.f32 1.442695, %v388_v32  ;;  %v402_v62 = vmul.f32 1.442695, %v389_v49  ;;  %v404_v57 = vmul.f32 1.442695, %v390_v34 }
  0xbc   : > { %v1901_v43 = vpop.eup %1900  ;;  %1920 = vpow2.f32 %v372_v40  ;;  %v406_v7 = vmul.f32 1.442695, %v391_v35  ;;  %vm3560_vm7 = vnez %v3542_v25  ;;  %vm3561_vm9 = vnez %v3544_v31 }
  0xbd   : > { %v1903_v21 = vpop.eup %1902  ;;  %1922 = vpow2.f32 %v374_v41 }
  0xbe   : > { %v1905_v36 = vpop.eup %1904  ;;  %1924 = vpow2.f32 %v392_v48 }
  0xbf   : > { %v1907_v3 = vpop.eup %1906  ;;  %1926 = vpow2.f32 %v394_v60 }
  0xc0   : > { %v1909_v37 = vpop.eup %1908  ;;  %1928 = vpow2.f32 %v396_v50 }
  0xc1   : > { %v1911_v17 = vpop.eup %1910  ;;  %1930 = vpow2.f32 %v398_v51  ;;  %v376_v63 = vadd.f32 %v1909_v37, %v1893_v28 }
  0xc2   : > { %v1913_v38 = vpop.eup %1912  ;;  %1932 = vpow2.f32 %v400_v56  ;;  %v377_v46 = vadd.f32 %v1911_v17, %v1895_v55 }
  0xc3   : > { %v1915_v58 = vpop.eup %1914  ;;  %1934 = vpow2.f32 %v402_v62  ;;  %v378_v47 = vadd.f32 %v1913_v38, %v1897_v42 }
  0xc4   : > { %v1917_v2 = vpop.eup %1916  ;;  %1936 = vpow2.f32 %v404_v57  ;;  %v379_v0 = vadd.f32 %v1915_v58, %v1899_v33 }
  0xc5   : > { %v1919_v39 = vpop.eup %1918  ;;  %1938 = vpow2.f32 %v406_v7  ;;  %v380_v19 = vadd.f32 %v1917_v2, %v1901_v43 }
  0xc6   : > { %v1921_v11 = vpop.eup %1920  ;;  %v381_v23 = vadd.f32 %v1919_v39, %v1903_v21 }
  0xc7   : > { %v1923_v15 = vpop.eup %1922  ;;  %v382_v53 = vadd.f32 %v1921_v11, %v1905_v36 }
  0xc8   : > { %v1925_v4 = vpop.eup %1924  ;;  %v383_v40 = vadd.f32 %v1923_v15, %v1907_v3 }
  0xc9   : > { %v1927_v5 = vpop.eup %1926  ;;  %v408_v20 = vadd.f32 %v1925_v4, %v376_v63 }
  0xca   : > { %v1929_v1 = vpop.eup %1928  ;;  %v409_v27 = vadd.f32 %v1927_v5, %v377_v46 }
  0xcb   : > { %v1931_v52 = vpop.eup %1930  ;;  %v410_v29 = vadd.f32 %v1929_v1, %v378_v47  ;;  %1940 = vrcp.f32 %v408_v20 }
  0xcc   : > { %v1933_v24 = vpop.eup %1932  ;;  %v411_v28 = vadd.f32 %v1931_v52, %v379_v0  ;;  %1942 = vrcp.f32 %v409_v27 }
  0xcd   : > { %v1935_v30 = vpop.eup %1934  ;;  %v412_v55 = vadd.f32 %v1933_v24, %v380_v19  ;;  %1944 = vrcp.f32 %v410_v29 }
  0xce   : > { %v1937_v41 = vpop.eup %1936  ;;  %v413_v59 = vadd.f32 %v1935_v30, %v381_v23  ;;  %1946 = vrcp.f32 %v411_v28 }
  0xcf   : > { %v1939_v42 = vpop.eup %1938  ;;  %v414_v32 = vadd.f32 %v1937_v41, %v382_v53  ;;  %1948 = vrcp.f32 %v412_v55 }
  0xd0   : > { %v415_v48 = vadd.f32 %v1939_v42, %v383_v40  ;;  %1950 = vrcp.f32 %v413_v59 }
  0xd1   : > { %1952 = vrcp.f32 %v414_v32 }
  0xd2   : > { %1954 = vrcp.f32 %v415_v48 }
  0xd5   : > { %v1941_v33 = vpop.eup %1940 }
  0xd6   : > { %v1943_v49 = vpop.eup %1942  ;;  %v2544_v60 = vsel %vm2182_vm0, %v1941_v33, 0.0 }
  0xd7   : > { %v1945_v43 = vpop.eup %1944  ;;  %v2548_v34 = vsel %vm2188_vm1, %v1943_v49, 0.0  ;;  %vm589_vm5 = vcmp.gt.f32.partialorder %v2544_v60, 0.33333334  ;;  %vm3558_vm1 = vnez %v3538_v18  ;;  %vm680_vm12 = vcmp.gt.f32.partialorder %v2544_v60, 0.4 }
  0xd8   : > { %v1947_v50 = vpop.eup %1946  ;;  %v2553_v21 = vsel %vm2194_vm2, %v1945_v43, 0.0  ;;  %v555_v35 = vadd.f32 %v2548_v34, %v2544_v60  ;;  %vm590_vm4 = vcmp.gt.f32.partialorder %v2548_v34, 0.33333334  ;;  %v1684_v8 = vsel %vm589_vm5, 1.0, %v2032_v13 }
  0xd9   : > { %v1949_v51 = vpop.eup %1948  ;;  %v2563_v9 = vsel %vm2201_vm3, %v1947_v50, 0.0  ;;  %vm591_vm0 = vcmp.gt.f32.partialorder %v2553_v21, 0.33333334  ;;  %v1685_v10 = vsel %vm590_vm4, 1.0, %v2032_v13  ;;  %vm3559_vm3 = vnez %v3540_v22 }
  0xda   : > { %v1951_v36 = vpop.eup %1950  ;;  %v2571_v56 = vsel %vm3558_vm1, %v1949_v51, 0.0  ;;  %v556_v3 = vadd.f32 %v555_v35, %v2553_v21  ;;  %vm592_vm2 = vcmp.gt.f32.partialorder %v2563_v9, 0.33333334  ;;  %v613_v37 = vadd.f32 %v1685_v10, %v1684_v8 }
  0xdb   : > { %v1953_v62 = vpop.eup %1952  ;;  %v2577_v12 = vsel %vm3559_vm3, %v1951_v36, 0.0  ;;  %v1686_v17 = vsel %vm591_vm0, 1.0, %v2032_v13  ;;  %vm593_vm6 = vcmp.gt.f32.partialorder %v2571_v56, 0.33333334  ;;  %v630_v38 = vsel %vm589_vm5, %v2544_v60, 0.0 }
  0xdc   : > { %v557_v57 = vadd.f32 %v556_v3, %v2563_v9  ;;  %v1955_v7 = vpop.eup %1954  ;;  %v614_v18 = vadd.f32 %v1686_v17, %v613_v37  ;;  %v2589_v58 = vsel %vm3560_vm7, %v1953_v62, 0.0  ;;  %v1687_v2 = vsel %vm592_vm2, 1.0, %v2032_v13 }
  0xdd   : > { %v631_v39 = vsel %vm590_vm4, %v2548_v34, 0.0  ;;  %vm594_vm8 = vcmp.gt.f32.partialorder %v2577_v12, 0.33333334  ;;  %v2601_v11 = vsel %vm3561_vm9, %v1955_v7, 0.0  ;;  %v1688_v46 = vsel %vm593_vm6, 1.0, %v2032_v13 }
  0xde   : > { %v558_v22 = vadd.f32 %v557_v57, %v2571_v56  ;;  %v615_v63 = vadd.f32 %v1687_v2, %v614_v18  ;;  %vm595_vm10 = vcmp.gt.f32.partialorder %v2589_v58, 0.33333334  ;;  %v638_v47 = vadd.f32 %v631_v39, %v630_v38 }
  0xdf   : > { %v655_v4 = vsel %vm589_vm5, %v2423_v44, 0.0  ;;  %v1689_v31 = vsel %vm594_vm8, 1.0, %v2032_v13  ;;  %v632_v5 = vsel %vm591_vm0, %v2553_v21, 0.0  ;;  %v656_v19 = vsel %vm590_vm4, %v2426_v45, 0.0 }
  0xe0   : > { %v559_v25 = vadd.f32 %v558_v22, %v2577_v12  ;;  %v616_v15 = vadd.f32 %v1688_v46, %v615_v63  ;;  %vm596_vm11 = vcmp.gt.f32.partialorder %v2601_v11, 0.33333334  ;;  %v639_v1 = vadd.f32 %v638_v47, %v632_v5 }
  0xe1   : > { %v1690_v27 = vsel %vm595_vm10, 1.0, %v2032_v13  ;;  %v633_v52 = vsel %vm592_vm2, %v2563_v9, 0.0  ;;  %v663_v53 = vadd.f32 %v656_v19, %v655_v4  ;;  %v657_v40 = vsel %vm591_vm0, %v2467_v6, 0.0 }
  0xe2   : > { %v560_v0 = vadd.f32 %v559_v25, %v2589_v58  ;;  %v617_v20 = vadd.f32 %v1689_v31, %v616_v15  ;;  %v640_v24 = vadd.f32 %v639_v1, %v633_v52  ;;  %vm681_vm13 = vcmp.gt.f32.partialorder %v2548_v34, 0.4 }
  0xe3   : > { %v1691_v28 = vsel %vm596_vm11, 1.0, %v2032_v13  ;;  %v634_v30 = vsel %vm593_vm6, %v2571_v56, 0.0  ;;  %v664_v55 = vadd.f32 %v663_v53, %v657_v40  ;;  %v635_v59 = vsel %vm594_vm8, %v2577_v12, 0.0 }
  0xe4   : > { %v561_v23 = vadd.f32 %v560_v0, %v2601_v11  ;;  %v618_v29 = vadd.f32 %v1690_v27, %v617_v20  ;;  %v641_v42 = vadd.f32 %v640_v24, %v634_v30  ;;  %v658_v32 = vsel %vm592_vm2, %v2481_v54, 0.0 }
  0xe5   : > { %v665_v48 = vadd.f32 %v664_v55, %v658_v32  ;;  %vm682_vm14 = vcmp.gt.f32.partialorder %v2553_v21, 0.4  ;;  %v1692_v33 = vsel %vm680_vm12, 1.0, %v2032_v13  ;;  %v1693_v49 = vsel %vm681_vm13, 1.0, %v2032_v13 }
  0xe6   : > { %562 = vadd.xlane.f32.xlu0 %v561_v23  ;;  %v619_v41 = vadd.f32 %v1691_v28, %v618_v29  ;;  %v636_v43 = vsel %vm595_vm10, %v2589_v58, 0.0  ;;  %v637_v50 = vsel %vm596_vm11, %v2601_v11, 0.0  ;;  %v642_v35 = vadd.f32 %v641_v42, %v635_v59 }
  0xe7   : > { %v659_v8 = vsel %vm593_vm6, %v2491_v61, 0.0  ;;  %v660_v51 = vsel %vm594_vm8, %v2501_v14, 0.0  ;;  %vm683_vm15 = vcmp.gt.f32.partialorder %v2563_v9, 0.4  ;;  %v704_v36 = vadd.f32 %v1693_v49, %v1692_v33 }
  0xe8   : > { %620 = vadd.xlane.f32.xlu1 %v619_v41  ;;  %v666_v10 = vadd.f32 %v665_v48, %v659_v8  ;;  %v643_v3 = vadd.f32 %v642_v35, %v636_v43  ;;  %v1694_v62 = vsel %vm682_vm14, 1.0, %v2032_v13  ;;  %v721_v37 = vsel %vm680_vm12, %v2544_v60, 0.0 }
  0xe9   : > { %v722_v57 = vsel %vm681_vm13, %v2548_v34, 0.0  ;;  %v661_v17 = vsel %vm595_vm10, %v2511_v16, 0.0  ;;  %vm684_vm5 = vcmp.gt.f32.partialorder %v2571_v56, 0.4  ;;  %v705_v18 = vadd.f32 %v1694_v62, %v704_v36 }
  0xea   : > { %v667_v7 = vadd.f32 %v666_v10, %v660_v51  ;;  %v644_v38 = vadd.f32 %v643_v3, %v637_v50  ;;  %v662_v22 = vsel %vm596_vm11, %v2521_v26, 0.0  ;;  %vm685_vm4 = vcmp.gt.f32.partialorder %v2577_v12, 0.4 }
  0xeb   : > { %v1695_v2 = vsel %vm683_vm15, 1.0, %v2032_v13  ;;  %v729_v25 = vadd.f32 %v722_v57, %v721_v37  ;;  %v746_v46 = vsel %vm680_vm12, %v2423_v44, 0.0  ;;  %vm686_vm0 = vcmp.gt.f32.partialorder %v2589_v58, 0.4 }
  0xec   : > { %v668_v39 = vadd.f32 %v667_v7, %v661_v17  ;;  %v706_v63 = vadd.f32 %v1695_v2, %v705_v18  ;;  %645 = vadd.xlane.f32.xlu0 %v644_v38  ;;  %v1696_v15 = vsel %vm684_vm5, 1.0, %v2032_v13  ;;  %v723_v47 = vsel %vm682_vm14, %v2553_v21, 0.0 }
  0xed   : > { %v747_v4 = vsel %vm681_vm13, %v2426_v45, 0.0  ;;  %vm687_vm1 = vcmp.gt.f32.partialorder %v2601_v11, 0.4  ;;  %v730_v5 = vadd.f32 %v729_v25, %v723_v47  ;;  %v1697_v19 = vsel %vm685_vm4, 1.0, %v2032_v13 }
  0xee   : > { %v669_v0 = vadd.f32 %v668_v39, %v662_v22  ;;  %v707_v31 = vadd.f32 %v1696_v15, %v706_v63  ;;  %v724_v20 = vsel %vm683_vm15, %v2563_v9, 0.0  ;;  %v748_v1 = vsel %vm682_vm14, %v2467_v6, 0.0 }
  0xef   : > { %v754_v23 = vadd.f32 %v747_v4, %v746_v46  ;;  %v731_v52 = vadd.f32 %v730_v5, %v724_v20  ;;  %vm771_vm2 = vcmp.gt.f32.partialorder %v2544_v60, 0.46666667  ;;  %vm772_vm3 = vcmp.gt.f32.partialorder %v2548_v34, 0.46666667 }
  0xf0   : > { %670 = vadd.xlane.f32.xlu1 %v669_v0  ;;  %v708_v27 = vadd.f32 %v1697_v19, %v707_v31  ;;  %v1698_v53 = vsel %vm686_vm0, 1.0, %v2032_v13  ;;  %v1699_v29 = vsel %vm687_vm1, 1.0, %v2032_v13  ;;  %v725_v24 = vsel %vm684_vm5, %v2571_v56, 0.0 }
  0xf1   : > { %v755_v40 = vadd.f32 %v754_v23, %v748_v1  ;;  %v726_v30 = vsel %vm685_vm4, %v2577_v12, 0.0  ;;  %v732_v55 = vadd.f32 %v731_v52, %v725_v24  ;;  %v749_v41 = vsel %vm683_vm15, %v2481_v54, 0.0 }
  0xf2   : > { %v709_v28 = vadd.f32 %v1698_v53, %v708_v27  ;;  %v727_v59 = vsel %vm686_vm0, %v2589_v58, 0.0  ;;  %v1700_v32 = vsel %vm771_vm2, 1.0, %v2032_v13  ;;  %v1701_v48 = vsel %vm772_vm3, 1.0, %v2032_v13 }
  0xf3   : > { %v756_v42 = vadd.f32 %v755_v40, %v749_v41  ;;  %v733_v49 = vadd.f32 %v732_v55, %v726_v30  ;;  %v750_v43 = vsel %vm684_vm5, %v2491_v61, 0.0  ;;  %vm773_vm6 = vcmp.gt.f32.partialorder %v2553_v21, 0.46666667 }
  0xf4   : > { %v710_v33 = vadd.f32 %v1699_v29, %v709_v28  ;;  %v728_v50 = vsel %vm687_vm1, %v2601_v11, 0.0  ;;  %v751_v35 = vsel %vm685_vm4, %v2501_v14, 0.0  ;;  %vm774_vm7 = vcmp.gt.f32.partialorder %v2563_v9, 0.46666667 }
  0xf5   : > { %v757_v8 = vadd.f32 %v756_v42, %v750_v43  ;;  %v734_v51 = vadd.f32 %v733_v49, %v727_v59  ;;  %v795_v10 = vadd.f32 %v1701_v48, %v1700_v32  ;;  %v812_v36 = vsel %vm771_vm2, %v2544_v60, 0.0 }
  0xf6   : > { %711 = vadd.xlane.f32.xlu0 %v710_v33  ;;  %v813_v3 = vsel %vm772_vm3, %v2548_v34, 0.0  ;;  %v752_v62 = vsel %vm686_vm0, %v2511_v16, 0.0  ;;  %v753_v37 = vsel %vm687_vm1, %v2521_v26, 0.0  ;;  %v1702_v17 = vsel %vm773_vm6, 1.0, %v2032_v13 }
  0xf7   : > { %v758_v57 = vadd.f32 %v757_v8, %v751_v35  ;;  %v735_v7 = vadd.f32 %v734_v51, %v728_v50  ;;  %vm775_vm8 = vcmp.gt.f32.partialorder %v2571_v56, 0.46666667  ;;  %vm776_vm9 = vcmp.gt.f32.partialorder %v2577_v12, 0.46666667 }
  0xf8   : > { %v796_v18 = vadd.f32 %v1702_v17, %v795_v10  ;;  %v1703_v22 = vsel %vm774_vm7, 1.0, %v2032_v13  ;;  %v820_v2 = vadd.f32 %v813_v3, %v812_v36  ;;  %v837_v39 = vsel %vm771_vm2, %v2423_v44, 0.0 }
  0xf9   : > { %v759_v38 = vadd.f32 %v758_v57, %v752_v62  ;;  %736 = vadd.xlane.f32.xlu1 %v735_v7  ;;  %vm777_vm10 = vcmp.gt.f32.partialorder %v2589_v58, 0.46666667  ;;  %v814_v25 = vsel %vm773_vm6, %v2553_v21, 0.0  ;;  %v838_v46 = vsel %vm772_vm3, %v2426_v45, 0.0 }
  0xfa   : > { %v797_v63 = vadd.f32 %v1703_v22, %v796_v18  ;;  %vm778_vm11 = vcmp.gt.f32.partialorder %v2601_v11, 0.46666667  ;;  %v1704_v47 = vsel %vm775_vm8, 1.0, %v2032_v13  ;;  %v821_v4 = vadd.f32 %v820_v2, %v814_v25 }
  0xfb   : > { %v760_v15 = vadd.f32 %v759_v38, %v753_v37  ;;  %v1705_v0 = vsel %vm776_vm9, 1.0, %v2032_v13  ;;  %v815_v5 = vsel %vm774_vm7, %v2563_v9, 0.0  ;;  %v845_v19 = vadd.f32 %v838_v46, %v837_v39 }
  0xfc   : > { %v798_v31 = vadd.f32 %v1704_v47, %v797_v63  ;;  %v822_v20 = vadd.f32 %v821_v4, %v815_v5  ;;  %v839_v1 = vsel %vm773_vm6, %v2467_v6, 0.0  ;;  %vm862_vm12 = vcmp.gt.f32.partialorder %v2544_v60, 0.53333336 }
  0xfd   : > { %761 = vadd.xlane.f32.xlu0 %v760_v15  ;;  %vm863_vm13 = vcmp.gt.f32.partialorder %v2548_v34, 0.53333336  ;;  %v1706_v23 = vsel %vm777_vm10, 1.0, %v2032_v13  ;;  %v816_v52 = vsel %vm775_vm8, %v2571_v56, 0.0  ;;  %v846_v53 = vadd.f32 %v845_v19, %v839_v1 }
  0xfe   : > { %v799_v27 = vadd.f32 %v1705_v0, %v798_v31  ;;  %v1707_v29 = vsel %vm778_vm11, 1.0, %v2032_v13  ;;  %v817_v24 = vsel %vm776_vm9, %v2577_v12, 0.0  ;;  %v823_v40 = vadd.f32 %v822_v20, %v816_v52 }
  0xff   : > { %v840_v28 = vsel %vm774_vm7, %v2481_v54, 0.0  ;;  %v1708_v41 = vsel %vm862_vm12, 1.0, %v2032_v13  ;;  %v1709_v59 = vsel %vm863_vm13, 1.0, %v2032_v13  ;;  %v818_v42 = vsel %vm777_vm10, %v2589_v58, 0.0 }
 0x100   : > { %v800_v30 = vadd.f32 %v1706_v23, %v799_v27  ;;  %v847_v55 = vadd.f32 %v846_v53, %v840_v28  ;;  %v824_v32 = vadd.f32 %v823_v40, %v817_v24  ;;  %v841_v48 = vsel %vm775_vm8, %v2491_v61, 0.0 }
 0x101   : > { %vm864_vm14 = vcmp.gt.f32.partialorder %v2553_v21, 0.53333336  ;;  %v819_v49 = vsel %vm778_vm11, %v2601_v11, 0.0  ;;  %v842_v43 = vsel %vm776_vm9, %v2501_v14, 0.0  ;;  %vm865_vm15 = vcmp.gt.f32.partialorder %v2563_v9, 0.53333336 }
 0x102   : > { %v801_v33 = vadd.f32 %v1707_v29, %v800_v30  ;;  %v848_v50 = vadd.f32 %v847_v55, %v841_v48  ;;  %v825_v35 = vadd.f32 %v824_v32, %v818_v42  ;;  %v886_v8 = vadd.f32 %v1709_v59, %v1708_v41 }
 0x103   : > { %v903_v51 = vsel %vm862_vm12, %v2544_v60, 0.0  ;;  %v843_v10 = vsel %vm777_vm10, %v2511_v16, 0.0  ;;  %v1710_v3 = vsel %vm864_vm14, 1.0, %v2032_v13  ;;  %v904_v62 = vsel %vm863_vm13, %v2548_v34, 0.0 }
 0x104   : > { %802 = vadd.xlane.f32.xlu1 %v801_v33  ;;  %v849_v36 = vadd.f32 %v848_v50, %v842_v43  ;;  %v826_v37 = vadd.f32 %v825_v35, %v819_v49  ;;  %v844_v57 = vsel %vm778_vm11, %v2521_v26, 0.0  ;;  %vm866_vm5 = vcmp.gt.f32.partialorder %v2571_v56, 0.53333336 }
 0x105   : > { %v887_v17 = vadd.f32 %v1710_v3, %v886_v8  ;;  %vm867_vm4 = vcmp.gt.f32.partialorder %v2577_v12, 0.53333336  ;;  %v1711_v18 = vsel %vm865_vm15, 1.0, %v2032_v13  ;;  %v911_v38 = vadd.f32 %v904_v62, %v903_v51 }
 0x106   : > { %v850_v7 = vadd.f32 %v849_v36, %v843_v10  ;;  %827 = vadd.xlane.f32.xlu0 %v826_v37  ;;  %v905_v2 = vsel %vm864_vm14, %v2553_v21, 0.0  ;;  %v928_v39 = vsel %vm862_vm12, %v2423_v44, 0.0  ;;  %v929_v63 = vsel %vm863_vm13, %v2426_v45, 0.0 }
 0x107   : > { %v888_v22 = vadd.f32 %v1711_v18, %v887_v17  ;;  %vm868_vm0 = vcmp.gt.f32.partialorder %v2589_v58, 0.53333336  ;;  %v1712_v46 = vsel %vm866_vm5, 1.0, %v2032_v13  ;;  %v912_v15 = vadd.f32 %v911_v38, %v905_v2 }
 0x108   : > { %v851_v25 = vadd.f32 %v850_v7, %v844_v57  ;;  %vm869_vm1 = vcmp.gt.f32.partialorder %v2601_v11, 0.53333336  ;;  %v1713_v47 = vsel %vm867_vm4, 1.0, %v2032_v13  ;;  %v906_v0 = vsel %vm865_vm15, %v2563_v9, 0.0 }
 0x109   : > { %v889_v4 = vadd.f32 %v1712_v46, %v888_v22  ;;  %v913_v31 = vadd.f32 %v912_v15, %v906_v0  ;;  %v936_v5 = vadd.f32 %v929_v63, %v928_v39  ;;  %vm953_vm2 = vcmp.gt.f32.partialorder %v2544_v60, 0.6 }
 0x10a   : > { %852 = vadd.xlane.f32.xlu1 %v851_v25  ;;  %vm954_vm3 = vcmp.gt.f32.partialorder %v2548_v34, 0.6  ;;  %v1714_v19 = vsel %vm868_vm0, 1.0, %v2032_v13  ;;  %v907_v1 = vsel %vm866_vm5, %v2571_v56, 0.0  ;;  %v930_v23 = vsel %vm864_vm14, %v2467_v6, 0.0 }
 0x10b   : > { %v890_v20 = vadd.f32 %v1713_v47, %v889_v4  ;;  %v1715_v27 = vsel %vm869_vm1, 1.0, %v2032_v13  ;;  %v908_v52 = vsel %vm867_vm4, %v2577_v12, 0.0  ;;  %v914_v53 = vadd.f32 %v913_v31, %v907_v1 }
 0x10c   : > { %v937_v29 = vadd.f32 %v936_v5, %v930_v23  ;;  %v931_v40 = vsel %vm865_vm15, %v2481_v54, 0.0  ;;  %v1716_v28 = vsel %vm953_vm2, 1.0, %v2032_v13  ;;  %v1717_v30 = vsel %vm954_vm3, 1.0, %v2032_v13 }
 0x10d   : > { %v891_v24 = vadd.f32 %v1714_v19, %v890_v20  ;;  %v909_v55 = vsel %vm868_vm0, %v2589_v58, 0.0  ;;  %v915_v41 = vadd.f32 %v914_v53, %v908_v52  ;;  %vm955_vm6 = vcmp.gt.f32.partialorder %v2553_v21, 0.6 }
 0x10e   : > { %v938_v59 = vadd.f32 %v937_v29, %v931_v40  ;;  %v910_v32 = vsel %vm869_vm1, %v2601_v11, 0.0  ;;  %v932_v48 = vsel %vm866_vm5, %v2491_v61, 0.0  ;;  %v933_v33 = vsel %vm867_vm4, %v2501_v14, 0.0 }
 0x10f   : > { %v892_v42 = vadd.f32 %v1715_v27, %v891_v24  ;;  %v916_v49 = vadd.f32 %v915_v41, %v909_v55  ;;  %vm956_vm7 = vcmp.gt.f32.partialorder %v2563_v9, 0.6  ;;  %v977_v50 = vadd.f32 %v1717_v30, %v1716_v28 }
 0x110   : > { %v939_v43 = vadd.f32 %v938_v59, %v932_v48  ;;  %v934_v35 = vsel %vm868_vm0, %v2511_v16, 0.0  ;;  %v1718_v8 = vsel %vm955_vm6, 1.0, %v2032_v13  ;;  %v994_v51 = vsel %vm953_vm2, %v2544_v60, 0.0 }
 0x111   : > { %893 = vadd.xlane.f32.xlu0 %v892_v42  ;;  %v995_v10 = vsel %vm954_vm3, %v2548_v34, 0.0  ;;  %v917_v36 = vadd.f32 %v916_v49, %v910_v32  ;;  %vm957_vm8 = vcmp.gt.f32.partialorder %v2571_v56, 0.6  ;;  %v978_v62 = vadd.f32 %v1718_v8, %v977_v50 }
 0x112   : > { %v940_v3 = vadd.f32 %v939_v43, %v933_v33  ;;  %vm958_vm9 = vcmp.gt.f32.partialorder %v2577_v12, 0.6  ;;  %v1719_v37 = vsel %vm956_vm7, 1.0, %v2032_v13  ;;  %v996_v57 = vsel %vm955_vm6, %v2553_v21, 0.0 }
 0x113   : > { %v1002_v17 = vadd.f32 %v995_v10, %v994_v51  ;;  %918 = vadd.xlane.f32.xlu1 %v917_v36  ;;  %v979_v18 = vadd.f32 %v1719_v37, %v978_v62  ;;  %v1019_v38 = vsel %vm953_vm2, %v2423_v44, 0.0  ;;  %v1020_v22 = vsel %vm954_vm3, %v2426_v45, 0.0 }
 0x114   : > { %v941_v7 = vadd.f32 %v940_v3, %v934_v35  ;;  %v935_v2 = vsel %vm869_vm1, %v2521_v26, 0.0  ;;  %vm959_vm10 = vcmp.gt.f32.partialorder %v2589_v58, 0.6  ;;  %v1720_v39 = vsel %vm957_vm8, 1.0, %v2032_v13 }
 0x115   : > { %v1003_v63 = vadd.f32 %v1002_v17, %v996_v57  ;;  %vm960_vm11 = vcmp.gt.f32.partialorder %v2601_v11, 0.6  ;;  %v980_v46 = vadd.f32 %v1720_v39, %v979_v18  ;;  %v997_v15 = vsel %vm956_vm7, %v2563_v9, 0.0 }
 0x116   : > { %v942_v25 = vadd.f32 %v941_v7, %v935_v2  ;;  %v1721_v47 = vsel %vm958_vm9, 1.0, %v2032_v13  ;;  %v998_v4 = vsel %vm957_vm8, %v2571_v56, 0.0  ;;  %v1027_v31 = vadd.f32 %v1020_v22, %v1019_v38 }
 0x117   : > { %v1004_v0 = vadd.f32 %v1003_v63, %v997_v15  ;;  %v981_v5 = vadd.f32 %v1721_v47, %v980_v46  ;;  %v1021_v19 = vsel %vm955_vm6, %v2467_v6, 0.0  ;;  %vm1044_vm12 = vcmp.gt.f32.partialorder %v2544_v60, 0.6666667 }
 0x118   : > { %943 = vadd.xlane.f32.xlu0 %v942_v25  ;;  %vm1045_vm13 = vcmp.gt.f32.partialorder %v2548_v34, 0.6666667  ;;  %v1722_v20 = vsel %vm959_vm10, 1.0, %v2032_v13  ;;  %v1723_v1 = vsel %vm960_vm11, 1.0, %v2032_v13  ;;  %v1028_v27 = vadd.f32 %v1027_v31, %v1021_v19 }
 0x119   : > { %v1005_v23 = vadd.f32 %v1004_v0, %v998_v4  ;;  %v982_v52 = vadd.f32 %v1722_v20, %v981_v5  ;;  %v999_v53 = vsel %vm958_vm9, %v2577_v12, 0.0  ;;  %v1000_v29 = vsel %vm959_vm10, %v2589_v58, 0.0 }
 0x11a   : > { %v1022_v24 = vsel %vm956_vm7, %v2481_v54, 0.0  ;;  %v1724_v30 = vsel %vm1044_vm12, 1.0, %v2032_v13  ;;  %v1725_v55 = vsel %vm1045_vm13, 1.0, %v2032_v13  ;;  %v1001_v59 = vsel %vm960_vm11, %v2601_v11, 0.0 }
 0x11b   : > { %v1006_v40 = vadd.f32 %v1005_v23, %v999_v53  ;;  %v1029_v28 = vadd.f32 %v1028_v27, %v1022_v24  ;;  %v983_v41 = vadd.f32 %v1723_v1, %v982_v52  ;;  %v1023_v42 = vsel %vm957_vm8, %v2491_v61, 0.0 }
 0x11c   : > { %vm1046_vm14 = vcmp.gt.f32.partialorder %v2553_v21, 0.6666667  ;;  %v1024_v48 = vsel %vm958_vm9, %v2501_v14, 0.0  ;;  %vm1047_vm15 = vcmp.gt.f32.partialorder %v2563_v9, 0.6666667  ;;  %v1025_v49 = vsel %vm959_vm10, %v2511_v16, 0.0 }
 0x11d   : > { %v1007_v32 = vadd.f32 %v1006_v40, %v1000_v29  ;;  %v1030_v33 = vadd.f32 %v1029_v28, %v1023_v42  ;;  %984 = vadd.xlane.f32.xlu1 %v983_v41  ;;  %v1068_v43 = vadd.f32 %v1725_v55, %v1724_v30  ;;  %v1085_v50 = vsel %vm1044_vm12, %v2544_v60, 0.0 }
 0x11e   : > { %v1086_v35 = vsel %vm1045_vm13, %v2548_v34, 0.0  ;;  %vm1048_vm5 = vcmp.gt.f32.partialorder %v2571_v56, 0.6666667  ;;  %v1726_v10 = vsel %vm1046_vm14, 1.0, %v2032_v13  ;;  %vm1049_vm4 = vcmp.gt.f32.partialorder %v2577_v12, 0.6666667 }
 0x11f   : > { %v1008_v8 = vadd.f32 %v1007_v32, %v1001_v59  ;;  %v1031_v51 = vadd.f32 %v1030_v33, %v1024_v48  ;;  %vm1050_vm0 = vcmp.gt.f32.partialorder %v2589_v58, 0.6666667  ;;  %v1727_v36 = vsel %vm1047_vm15, 1.0, %v2032_v13 }
 0x120   : > { %v1069_v3 = vadd.f32 %v1726_v10, %v1068_v43  ;;  %v1093_v37 = vadd.f32 %v1086_v35, %v1085_v50  ;;  %v1110_v57 = vsel %vm1044_vm12, %v2423_v44, 0.0  ;;  %v1111_v17 = vsel %vm1045_vm13, %v2426_v45, 0.0 }
 0x121   : > { %1009 = vadd.xlane.f32.xlu0 %v1008_v8  ;;  %v1032_v62 = vadd.f32 %v1031_v51, %v1025_v49  ;;  %v1026_v7 = vsel %vm960_vm11, %v2521_v26, 0.0  ;;  %vm1051_vm1 = vcmp.gt.f32.partialorder %v2601_v11, 0.6666667  ;;  %v1087_v38 = vsel %vm1046_vm14, %v2553_v21, 0.0 }
 0x122   : > { %v1070_v18 = vadd.f32 %v1727_v36, %v1069_v3  ;;  %v1728_v2 = vsel %vm1048_vm5, 1.0, %v2032_v13  ;;  %v1729_v39 = vsel %vm1049_vm4, 1.0, %v2032_v13  ;;  %v1094_v63 = vadd.f32 %v1093_v37, %v1087_v38 }
 0x123   : > { %v1033_v22 = vadd.f32 %v1032_v62, %v1026_v7  ;;  %v1730_v25 = vsel %vm1050_vm0, 1.0, %v2032_v13  ;;  %v1088_v15 = vsel %vm1047_vm15, %v2563_v9, 0.0  ;;  %v1118_v47 = vadd.f32 %v1111_v17, %v1110_v57 }
 0x124   : > { %v1071_v46 = vadd.f32 %v1728_v2, %v1070_v18  ;;  %v1095_v4 = vadd.f32 %v1094_v63, %v1088_v15  ;;  %v1112_v0 = vsel %vm1046_vm14, %v2467_v6, 0.0  ;;  %vm1135_vm2 = vcmp.gt.f32.partialorder %v2544_v60, 0.73333335 }
 0x125   : > { %1034 = vadd.xlane.f32.xlu1 %v1033_v22  ;;  %vm1136_vm3 = vcmp.gt.f32.partialorder %v2548_v34, 0.73333335  ;;  %v1731_v31 = vsel %vm1051_vm1, 1.0, %v2032_v13  ;;  %v1089_v19 = vsel %vm1048_vm5, %v2571_v56, 0.0  ;;  %v1119_v20 = vadd.f32 %v1118_v47, %v1112_v0 }
 0x126   : > { %v1072_v5 = vadd.f32 %v1729_v39, %v1071_v46  ;;  %v1090_v1 = vsel %vm1049_vm4, %v2577_v12, 0.0  ;;  %v1091_v23 = vsel %vm1050_vm0, %v2589_v58, 0.0  ;;  %v1096_v27 = vadd.f32 %v1095_v4, %v1089_v19 }
 0x127   : > { %v1113_v52 = vsel %vm1047_vm15, %v2481_v54, 0.0  ;;  %v1732_v24 = vsel %vm1135_vm2, 1.0, %v2032_v13  ;;  %v1733_v40 = vsel %vm1136_vm3, 1.0, %v2032_v13  ;;  %v1092_v28 = vsel %vm1051_vm1, %v2601_v11, 0.0 }
 0x128   : > { %v1073_v53 = vadd.f32 %v1730_v25, %v1072_v5  ;;  %v1120_v29 = vadd.f32 %v1119_v20, %v1113_v52  ;;  %v1097_v30 = vadd.f32 %v1096_v27, %v1090_v1  ;;  %v1114_v55 = vsel %vm1048_vm5, %v2491_v61, 0.0 }
 0x129   : > { %vm1137_vm6 = vcmp.gt.f32.partialorder %v2553_v21, 0.73333335  ;;  %v1115_v59 = vsel %vm1049_vm4, %v2501_v14, 0.0  ;;  %vm1138_vm7 = vcmp.gt.f32.partialorder %v2563_v9, 0.73333335  ;;  %v1159_v48 = vadd.f32 %v1733_v40, %v1732_v24 }
 0x12a   : > { %v1074_v41 = vadd.f32 %v1731_v31, %v1073_v53  ;;  %v1121_v42 = vadd.f32 %v1120_v29, %v1114_v55  ;;  %v1098_v32 = vadd.f32 %v1097_v30, %v1091_v23  ;;  %v1176_v33 = vsel %vm1135_vm2, %v2544_v60, 0.0 }
 0x12b   : > { %v1177_v49 = vsel %vm1136_vm3, %v2548_v34, 0.0  ;;  %v1116_v43 = vsel %vm1050_vm0, %v2511_v16, 0.0  ;;  %v1117_v50 = vsel %vm1051_vm1, %v2521_v26, 0.0  ;;  %v1734_v8 = vsel %vm1137_vm6, 1.0, %v2032_v13 }
 0x12c   : > { %1075 = vadd.xlane.f32.xlu0 %v1074_v41  ;;  %v1122_v35 = vadd.f32 %v1121_v42, %v1115_v59  ;;  %v1099_v51 = vadd.f32 %v1098_v32, %v1092_v28  ;;  %vm1139_vm8 = vcmp.gt.f32.partialorder %v2571_v56, 0.73333335  ;;  %vm1140_vm9 = vcmp.gt.f32.partialorder %v2577_v12, 0.73333335 }
 0x12d   : > { %v1160_v10 = vadd.f32 %v1734_v8, %v1159_v48  ;;  %v1735_v3 = vsel %vm1138_vm7, 1.0, %v2032_v13  ;;  %v1184_v62 = vadd.f32 %v1177_v49, %v1176_v33  ;;  %v1201_v37 = vsel %vm1135_vm2, %v2423_v44, 0.0 }
 0x12e   : > { %v1123_v36 = vadd.f32 %v1122_v35, %v1116_v43  ;;  %1100 = vadd.xlane.f32.xlu1 %v1099_v51  ;;  %vm1141_vm10 = vcmp.gt.f32.partialorder %v2589_v58, 0.73333335  ;;  %v1178_v17 = vsel %vm1137_vm6, %v2553_v21, 0.0  ;;  %v1202_v7 = vsel %vm1136_vm3, %v2426_v45, 0.0 }
 0x12f   : > { %v1161_v57 = vadd.f32 %v1735_v3, %v1160_v10  ;;  %vm1142_vm11 = vcmp.gt.f32.partialorder %v2601_v11, 0.73333335  ;;  %v1736_v38 = vsel %vm1139_vm8, 1.0, %v2032_v13  ;;  %v1185_v22 = vadd.f32 %v1184_v62, %v1178_v17 }
 0x130   : > { %v1124_v18 = vadd.f32 %v1123_v36, %v1117_v50  ;;  %v1737_v2 = vsel %vm1140_vm9, 1.0, %v2032_v13  ;;  %v1179_v63 = vsel %vm1138_vm7, %v2563_v9, 0.0  ;;  %v1209_v25 = vadd.f32 %v1202_v7, %v1201_v37 }
 0x131   : > { %v1162_v39 = vadd.f32 %v1736_v38, %v1161_v57  ;;  %v1186_v46 = vadd.f32 %v1185_v22, %v1179_v63  ;;  %v1203_v15 = vsel %vm1137_vm6, %v2467_v6, 0.0  ;;  %vm1226_vm12 = vcmp.gt.f32.partialorder %v2544_v60, 0.8 }
 0x132   : > { %1125 = vadd.xlane.f32.xlu0 %v1124_v18  ;;  %vm1227_vm13 = vcmp.gt.f32.partialorder %v2548_v34, 0.8  ;;  %v1738_v47 = vsel %vm1141_vm10, 1.0, %v2032_v13  ;;  %v1180_v0 = vsel %vm1139_vm8, %v2571_v56, 0.0  ;;  %v1210_v31 = vadd.f32 %v1209_v25, %v1203_v15 }
 0x133   : > { %v1163_v4 = vadd.f32 %v1737_v2, %v1162_v39  ;;  %v1739_v5 = vsel %vm1142_vm11, 1.0, %v2032_v13  ;;  %v1181_v19 = vsel %vm1140_vm9, %v2577_v12, 0.0  ;;  %v1187_v20 = vadd.f32 %v1186_v46, %v1180_v0 }
 0x134   : > { %v1204_v1 = vsel %vm1138_vm7, %v2481_v54, 0.0  ;;  %v1740_v52 = vsel %vm1226_vm12, 1.0, %v2032_v13  ;;  %v1741_v53 = vsel %vm1227_vm13, 1.0, %v2032_v13  ;;  %v1182_v29 = vsel %vm1141_vm10, %v2589_v58, 0.0 }
 0x135   : > { %v1164_v23 = vadd.f32 %v1738_v47, %v1163_v4  ;;  %v1211_v27 = vadd.f32 %v1210_v31, %v1204_v1  ;;  %v1188_v24 = vadd.f32 %v1187_v20, %v1181_v19  ;;  %v1205_v40 = vsel %vm1139_vm8, %v2491_v61, 0.0 }
 0x136   : > { %vm1228_vm14 = vcmp.gt.f32.partialorder %v2553_v21, 0.8  ;;  %v1183_v30 = vsel %vm1142_vm11, %v2601_v11, 0.0  ;;  %v1206_v55 = vsel %vm1140_vm9, %v2501_v14, 0.0  ;;  %vm1229_vm15 = vcmp.gt.f32.partialorder %v2563_v9, 0.8 }
 0x137   : > { %v1165_v28 = vadd.f32 %v1739_v5, %v1164_v23  ;;  %v1212_v41 = vadd.f32 %v1211_v27, %v1205_v40  ;;  %v1189_v59 = vadd.f32 %v1188_v24, %v1182_v29  ;;  %v1250_v42 = vadd.f32 %v1741_v53, %v1740_v52 }
 0x138   : > { %v1267_v32 = vsel %vm1226_vm12, %v2544_v60, 0.0  ;;  %v1207_v48 = vsel %vm1141_vm10, %v2511_v16, 0.0  ;;  %v1742_v49 = vsel %vm1228_vm14, 1.0, %v2032_v13  ;;  %v1268_v43 = vsel %vm1227_vm13, %v2548_v34, 0.0 }
 0x139   : > { %1166 = vadd.xlane.f32.xlu1 %v1165_v28  ;;  %v1213_v33 = vadd.f32 %v1212_v41, %v1206_v55  ;;  %v1190_v50 = vadd.f32 %v1189_v59, %v1183_v30  ;;  %v1208_v35 = vsel %vm1142_vm11, %v2521_v26, 0.0  ;;  %vm1230_vm5 = vcmp.gt.f32.partialorder %v2571_v56, 0.8 }
 0x13a   : > { %v1251_v8 = vadd.f32 %v1742_v49, %v1250_v42  ;;  %vm1231_vm4 = vcmp.gt.f32.partialorder %v2577_v12, 0.8  ;;  %v1743_v10 = vsel %vm1229_vm15, 1.0, %v2032_v13  ;;  %v1275_v36 = vadd.f32 %v1268_v43, %v1267_v32 }
 0x13b   : > { %v1214_v51 = vadd.f32 %v1213_v33, %v1207_v48  ;;  %1191 = vadd.xlane.f32.xlu0 %v1190_v50  ;;  %v1269_v62 = vsel %vm1228_vm14, %v2553_v21, 0.0  ;;  %v1292_v37 = vsel %vm1226_vm12, %v2423_v44, 0.0  ;;  %v1293_v57 = vsel %vm1227_vm13, %v2426_v45, 0.0 }
 0x13c   : > { %v1252_v3 = vadd.f32 %v1743_v10, %v1251_v8  ;;  %vm1232_vm0 = vcmp.gt.f32.partialorder %v2589_v58, 0.8  ;;  %v1744_v7 = vsel %vm1230_vm5, 1.0, %v2032_v13  ;;  %v1276_v18 = vadd.f32 %v1275_v36, %v1269_v62 }
 0x13d   : > { %v1215_v17 = vadd.f32 %v1214_v51, %v1208_v35  ;;  %vm1233_vm1 = vcmp.gt.f32.partialorder %v2601_v11, 0.8  ;;  %v1745_v38 = vsel %vm1231_vm4, 1.0, %v2032_v13  ;;  %v1270_v2 = vsel %vm1229_vm15, %v2563_v9, 0.0 }
 0x13e   : > { %v1253_v22 = vadd.f32 %v1744_v7, %v1252_v3  ;;  %v1277_v39 = vadd.f32 %v1276_v18, %v1270_v2  ;;  %v1300_v63 = vadd.f32 %v1293_v57, %v1292_v37  ;;  %vm1317_vm2 = vcmp.gt.f32.partialorder %v2544_v60, 0.8666667 }
 0x13f   : > { %1216 = vadd.xlane.f32.xlu1 %v1215_v17  ;;  %vm1318_vm3 = vcmp.gt.f32.partialorder %v2548_v34, 0.8666667  ;;  %v1746_v25 = vsel %vm1232_vm0, 1.0, %v2032_v13  ;;  %v1271_v15 = vsel %vm1230_vm5, %v2571_v56, 0.0  ;;  %v1294_v47 = vsel %vm1228_vm14, %v2467_v6, 0.0 }
 0x140   : > { %v1254_v46 = vadd.f32 %v1745_v38, %v1253_v22  ;;  %v1747_v4 = vsel %vm1233_vm1, 1.0, %v2032_v13  ;;  %v1272_v0 = vsel %vm1231_vm4, %v2577_v12, 0.0  ;;  %v1278_v31 = vadd.f32 %v1277_v39, %v1271_v15 }
 0x141   : > { %v1301_v5 = vadd.f32 %v1300_v63, %v1294_v47  ;;  %v1295_v20 = vsel %vm1229_vm15, %v2481_v54, 0.0  ;;  %v1748_v1 = vsel %vm1317_vm2, 1.0, %v2032_v13  ;;  %v1749_v23 = vsel %vm1318_vm3, 1.0, %v2032_v13 }
 0x142   : > { %v1255_v19 = vadd.f32 %v1746_v25, %v1254_v46  ;;  %v1273_v27 = vsel %vm1232_vm0, %v2589_v58, 0.0  ;;  %v1279_v52 = vadd.f32 %v1278_v31, %v1272_v0  ;;  %vm1319_vm6 = vcmp.gt.f32.partialorder %v2553_v21, 0.8666667 }
 0x143   : > { %v1302_v53 = vadd.f32 %v1301_v5, %v1295_v20  ;;  %v1274_v24 = vsel %vm1233_vm1, %v2601_v11, 0.0  ;;  %v1296_v40 = vsel %vm1230_vm5, %v2491_v61, 0.0  ;;  %v1297_v28 = vsel %vm1231_vm4, %v2501_v14, 0.0 }
 0x144   : > { %v1256_v29 = vadd.f32 %v1747_v4, %v1255_v19  ;;  %v1280_v30 = vadd.f32 %v1279_v52, %v1273_v27  ;;  %vm1320_vm7 = vcmp.gt.f32.partialorder %v2563_v9, 0.8666667  ;;  %v1341_v41 = vadd.f32 %v1749_v23, %v1748_v1 }
 0x145   : > { %v1303_v55 = vadd.f32 %v1302_v53, %v1296_v40  ;;  %v1298_v59 = vsel %vm1232_vm0, %v2511_v16, 0.0  ;;  %v1750_v42 = vsel %vm1319_vm6, 1.0, %v2032_v13  ;;  %v1358_v32 = vsel %vm1317_vm2, %v2544_v60, 0.0 }
 0x146   : > { %1257 = vadd.xlane.f32.xlu0 %v1256_v29  ;;  %v1359_v48 = vsel %vm1318_vm3, %v2548_v34, 0.0  ;;  %v1281_v33 = vadd.f32 %v1280_v30, %v1274_v24  ;;  %vm1321_vm8 = vcmp.gt.f32.partialorder %v2571_v56, 0.8666667  ;;  %v1342_v43 = vadd.f32 %v1750_v42, %v1341_v41 }
 0x147   : > { %v1304_v49 = vadd.f32 %v1303_v55, %v1297_v28  ;;  %vm1322_vm9 = vcmp.gt.f32.partialorder %v2577_v12, 0.8666667  ;;  %v1751_v50 = vsel %vm1320_vm7, 1.0, %v2032_v13  ;;  %v1360_v35 = vsel %vm1319_vm6, %v2553_v21, 0.0 }
 0x148   : > { %v1366_v8 = vadd.f32 %v1359_v48, %v1358_v32  ;;  %1282 = vadd.xlane.f32.xlu1 %v1281_v33  ;;  %v1343_v10 = vadd.f32 %v1751_v50, %v1342_v43  ;;  %v1383_v36 = vsel %vm1317_vm2, %v2423_v44, 0.0  ;;  %v1384_v3 = vsel %vm1318_vm3, %v2426_v45, 0.0 }
 0x149   : > { %v1305_v51 = vadd.f32 %v1304_v49, %v1298_v59  ;;  %v1299_v62 = vsel %vm1233_vm1, %v2521_v26, 0.0  ;;  %vm1323_vm10 = vcmp.gt.f32.partialorder %v2589_v58, 0.8666667  ;;  %v1752_v37 = vsel %vm1321_vm8, 1.0, %v2032_v13 }
 0x14a   : > { %v1367_v57 = vadd.f32 %v1366_v8, %v1360_v35  ;;  %vm1324_vm11 = vcmp.gt.f32.partialorder %v2601_v11, 0.8666667  ;;  %v1344_v7 = vadd.f32 %v1752_v37, %v1343_v10  ;;  %v1361_v18 = vsel %vm1320_vm7, %v2563_v9, 0.0 }
 0x14b   : > { %v1306_v17 = vadd.f32 %v1305_v51, %v1299_v62  ;;  %v1753_v38 = vsel %vm1322_vm9, 1.0, %v2032_v13  ;;  %v1362_v22 = vsel %vm1321_vm8, %v2571_v56, 0.0  ;;  %v1391_v39 = vadd.f32 %v1384_v3, %v1383_v36  ;;  %v546_v3 = vpop.xlane.xlu0 %545 }
 0x14c   : > { %v1368_v2 = vadd.f32 %v1367_v57, %v1361_v18  ;;  %v1345_v63 = vadd.f32 %v1753_v38, %v1344_v7  ;;  %v1385_v25 = vsel %vm1319_vm6, %v2467_v6, 0.0  ;;  %vm1408_vm12 = vcmp.gt.f32.partialorder %v2544_v60, 0.93333334 }
 0x14d   : > { %1307 = vadd.xlane.f32.xlu0 %v1306_v17  ;;  %vm1409_vm13 = vcmp.gt.f32.partialorder %v2548_v34, 0.93333334  ;;  %v1754_v46 = vsel %vm1323_vm10, 1.0, %v2032_v13  ;;  %v1392_v47 = vadd.f32 %v1391_v39, %v1385_v25  ;;  %v1755_v4 = vsel %vm1324_vm11, 1.0, %v2032_v13 }
 0x14e   : > { %v1369_v15 = vadd.f32 %v1368_v2, %v1362_v22  ;;  %v1346_v0 = vadd.f32 %v1754_v46, %v1345_v63  ;;  %v1363_v31 = vsel %vm1322_vm9, %v2577_v12, 0.0  ;;  %v1386_v5 = vsel %vm1320_vm7, %v2481_v54, 0.0 }
 0x14f   : > { %v1393_v20 = vadd.f32 %v1392_v47, %v1386_v5  ;;  %v1756_v1 = vsel %vm1408_vm12, 1.0, %v2032_v13  ;;  %v1757_v23 = vsel %vm1409_vm13, 1.0, %v2032_v13  ;;  %v1364_v52 = vsel %vm1323_vm10, %v2589_v58, 0.0 }
 0x150   : > { %v1370_v19 = vadd.f32 %v1369_v15, %v1363_v31  ;;  %v1347_v27 = vadd.f32 %v1755_v4, %v1346_v0  ;;  %v1387_v53 = vsel %vm1321_vm8, %v2491_v61, 0.0  ;;  %vm1410_vm14 = vcmp.gt.f32.partialorder %v2553_v21, 0.93333334 }
 0x151   : > { %v1365_v29 = vsel %vm1324_vm11, %v2601_v11, 0.0  ;;  %v1394_v40 = vadd.f32 %v1393_v20, %v1387_v53  ;;  %vm1411_vm15 = vcmp.gt.f32.partialorder %v2563_v9, 0.93333334  ;;  %v1388_v28 = vsel %vm1322_vm9, %v2501_v14, 0.0 }
 0x152   : > { %v1371_v24 = vadd.f32 %v1370_v19, %v1364_v52  ;;  %1348 = vadd.xlane.f32.xlu1 %v1347_v27  ;;  %v1432_v30 = vadd.f32 %v1757_v23, %v1756_v1  ;;  %v1449_v55 = vsel %vm1408_vm12, %v2544_v60, 0.0  ;;  %v1450_v41 = vsel %vm1409_vm13, %v2548_v34, 0.0 }
 0x153   : > { %v1395_v42 = vadd.f32 %v1394_v40, %v1388_v28  ;;  %v1758_v32 = vsel %vm1410_vm14, 1.0, %v2032_v13  ;;  %v1389_v48 = vsel %vm1323_vm10, %v2511_v16, 0.0  ;;  %vm1412_vm5 = vcmp.gt.f32.partialorder %v2571_v56, 0.93333334 }
 0x154   : > { %v1372_v59 = vadd.f32 %v1371_v24, %v1365_v29  ;;  %v1759_v33 = vsel %vm1411_vm15, 1.0, %v2032_v13  ;;  %v1433_v49 = vadd.f32 %v1758_v32, %v1432_v30  ;;  %v1457_v50 = vadd.f32 %v1450_v41, %v1449_v55  ;;  %v580_v29 = vpop.xlane.xlu1 %579 }
 0x155   : > { %v1396_v43 = vadd.f32 %v1395_v42, %v1389_v48  ;;  %v1474_v35 = vsel %vm1408_vm12, %v2423_v44, 0.0  ;;  %v1475_v8 = vsel %vm1409_vm13, %v2426_v45, 0.0  ;;  %v1390_v51 = vsel %vm1324_vm11, %v2521_v26, 0.0 }
 0x156   : > { %1373 = vadd.xlane.f32.xlu0 %v1372_v59  ;;  %vm1413_vm4 = vcmp.gt.f32.partialorder %v2577_v12, 0.93333334  ;;  %v1434_v10 = vadd.f32 %v1759_v33, %v1433_v49  ;;  %v1451_v36 = vsel %vm1410_vm14, %v2553_v21, 0.0  ;;  %v1760_v44 = vsel %vm1412_vm5, 1.0, %v2032_v13 }
 0x157   : > { %v1397_v62 = vadd.f32 %v1396_v43, %v1390_v51  ;;  %v1458_v60 = vadd.f32 %v1457_v50, %v1451_v36  ;;  %vm1414_vm0 = vcmp.gt.f32.partialorder %v2589_v58, 0.93333334  ;;  %v1452_v34 = vsel %vm1411_vm15, %v2563_v9, 0.0 }
 0x158   : > { %v1435_v45 = vadd.f32 %v1760_v44, %v1434_v10  ;;  %v1482_v37 = vadd.f32 %v1475_v8, %v1474_v35  ;;  %v1761_v57 = vsel %vm1413_vm4, 1.0, %v2032_v13  ;;  %v1476_v7 = vsel %vm1410_vm14, %v2467_v6, 0.0 }
 0x159   : > { %1398 = vadd.xlane.f32.xlu1 %v1397_v62  ;;  %v1459_v17 = vadd.f32 %v1458_v60, %v1452_v34  ;;  %v547_v18 = vrot.slane %v546_v3, 4  ;;  %vm1415_vm1 = vcmp.gt.f32.partialorder %v2601_v11, 0.93333334  ;;  %v1453_v22 = vsel %vm1412_vm5, %v2571_v56, 0.0 }
 0x15a   : > { %v1436_v38 = vadd.f32 %v1761_v57, %v1435_v45  ;;  %v1483_v2 = vadd.f32 %v1482_v37, %v1476_v7  ;;  %v1762_v39 = vsel %vm1414_vm0, 1.0, %v2032_v13  ;;  %v1477_v25 = vsel %vm1411_vm15, %v2481_v54, 0.0 }
 0x15b   : > { %v1460_v63 = vadd.f32 %v1459_v17, %v1453_v22  ;;  %v548_v21 = vadd.f32 %v547_v18, %v546_v3  ;;  %v1454_v46 = vsel %vm1413_vm4, %v2577_v12, 0.0  ;;  %v1763_v47 = vsel %vm1415_vm1, 1.0, %v2032_v13 }
 0x15c   : > { %v1437_v6 = vadd.f32 %v1762_v39, %v1436_v38  ;;  %v1484_v15 = vadd.f32 %v1483_v2, %v1477_v25  ;;  %v1478_v0 = vsel %vm1412_vm5, %v2491_v61, 0.0  ;;  %v1455_v54 = vsel %vm1414_vm0, %v2589_v58, 0.0 }
 0x15d   : > { %v1461_v4 = vadd.f32 %v1460_v63, %v1454_v46  ;;  %v549_v31 = vrot.slane %v548_v21, 2  ;;  %v1479_v20 = vsel %vm1413_vm4, %v2501_v14, 0.0  ;;  %v1456_v13 = vsel %vm1415_vm1, %v2601_v11, 0.0 }
 0x15e   : > { %v1438_v5 = vadd.f32 %v1763_v47, %v1437_v6  ;;  %v1485_v9 = vadd.f32 %v1484_v15, %v1478_v0  ;;  %v1480_v23 = vsel %vm1414_vm0, %v2511_v16, 0.0  ;;  %v1481_v12 = vsel %vm1415_vm1, %v2521_v26, 0.0 }
 0x15f   : > { %v1462_v19 = vadd.f32 %v1461_v4, %v1455_v54  ;;  %v550_v1 = vadd.f32 %v549_v31, %v548_v21  ;;  %v581_v24 = vrot.slane %v580_v29, 4  ;;  %vm1499_vm2 = vcmask 7168  }
 0x160   : > { %1439 = vadd.xlane.f32.xlu0 %v1438_v5  ;;  %v1486_v56 = vadd.f32 %v1485_v9, %v1479_v20  ;;  %vm1501_vm3 = vcmask 15360   ;;  %vm1503_vm6 = vcmask 23552   ;;  %vm1505_vm7 = vcmask 31744  }
 0x161   : > { %v1463_v61 = vadd.f32 %v1462_v19, %v1456_v13  ;;  %v551_v27 = vrot.slane %v550_v1, 1  ;;  %v582_v40 = vadd.f32 %v581_v24, %v580_v29  ;;  %vm1507_vm8 = vcmask 39936  }
 0x162   : > { %v1487_v52 = vadd.f32 %v1486_v56, %v1480_v23  ;;  %vm1509_vm9 = vcmask 48128   ;;  %vm1511_vm10 = vcmask 56320   ;;  %vm1513_vm11 = vcmask 64512  }
 0x163   : > { %1464 = vadd.xlane.f32.xlu1 %v1463_v61  ;;  %v552_v14 = vadd.f32 %v551_v27, %v550_v1  ;;  %v583_v28 = vrot.slane %v582_v40, 2  ;;  %vm1515_vm12 = vcmask 72704   ;;  %vm1517_vm13 = vcmask 80896  }
 0x164   : > { %v1488_v53 = vadd.f32 %v1487_v52, %v1481_v12  ;;  %vm1545_vm14 = vcmask 1040384   ;;  %vm1547_vm15 = vcmask 1041408   ;;  %vm1549_vm5 = vcmask 83968  }
 0x165   : > { %1772 = vpush %v552_v14  ;;  %v584_v59 = vadd.f32 %v583_v28, %v582_v40 }
 0x166   : > { %1489 = vadd.xlane.f32.xlu0 %v1488_v53 }
 0x167   : > { %v585_v11 = vrot.slane %v584_v59, 1 }
 0x169   : > { %v586_v10 = vadd.f32 %v585_v11, %v584_v59 }
 0x173   : > { %v563_v30 = vpop.xlane.xlu0 %562 }
 0x174   : > { %v564_v55 = vrot.slane %v563_v30, 4 }
 0x175   : > { %v621_v58 = vpop.xlane.xlu1 %620 }
 0x176   : > { %v565_v41 = vadd.f32 %v564_v55, %v563_v30  ;;  %v622_v16 = vrot.slane %v621_v58, 4 }
 0x178   : > { %v566_v42 = vrot.slane %v565_v41, 2  ;;  %v623_v32 = vadd.f32 %v622_v16, %v621_v58 }
 0x179   : > { %v646_v26 = vpop.xlane.xlu0 %645 }
 0x17a   : > { %v567_v48 = vadd.f32 %v566_v42, %v565_v41  ;;  %v624_v33 = vrot.slane %v623_v32, 2  ;;  %v647_v43 = vrot.slane %v646_v26, 4 }
 0x17c   : > { %v568_v49 = vrot.slane %v567_v48, 1  ;;  %v625_v50 = vadd.f32 %v624_v33, %v623_v32  ;;  %v648_v8 = vadd.f32 %v647_v43, %v646_v26 }
 0x17d   : > { %v671_v51 = vpop.xlane.xlu1 %670 }
 0x17e   : > { %v569_v35 = vadd.f32 %v568_v49, %v567_v48  ;;  %v626_v36 = vrot.slane %v625_v50, 1  ;;  %v672_v3 = vrot.slane %v671_v51, 4  ;;  %v649_v62 = vrot.slane %v648_v8, 2 }
 0x180   : > { %1774 = vpush %v569_v35  ;;  %v627_v44 = vadd.f32 %v626_v36, %v625_v50  ;;  %v673_v60 = vadd.f32 %v672_v3, %v671_v51  ;;  %v650_v45 = vadd.f32 %v649_v62, %v648_v8 }
 0x181   : > { %1776 = vpush %v586_v10 }
 0x182   : > { %1778 = vpush %v627_v44  ;;  %v674_v34 = vrot.slane %v673_v60, 2  ;;  %v651_v57 = vrot.slane %v650_v45, 1 }
 0x183   : > { %v712_v37 = vpop.xlane.xlu0 %711 }
 0x184   : > { %v713_v17 = vrot.slane %v712_v37, 4  ;;  %v675_v7 = vadd.f32 %v674_v34, %v673_v60  ;;  %v652_v18 = vadd.f32 %v651_v57, %v650_v45 }
 0x186   : > { %v714_v38 = vadd.f32 %v713_v17, %v712_v37  ;;  %v676_v22 = vrot.slane %v675_v7, 1  ;;  %v737_v2 = vpop.xlane.xlu1 %736  ;;  %1780 = vpush %v652_v18 }
 0x187   : > { %v738_v63 = vrot.slane %v737_v2, 4 }
 0x188   : > { %v715_v39 = vrot.slane %v714_v38, 2  ;;  %v677_v25 = vadd.f32 %v676_v22, %v675_v7 }
 0x189   : > { %v739_v21 = vadd.f32 %v738_v63, %v737_v2 }
 0x18a   : > { %v762_v6 = vpop.xlane.xlu0 %761  ;;  %1782 = vpush %v677_v25  ;;  %v716_v46 = vadd.f32 %v715_v39, %v714_v38 }
 0x18b   : > { %v763_v15 = vrot.slane %v762_v6, 4  ;;  %v740_v47 = vrot.slane %v739_v21, 2 }
 0x18c   : > { %v717_v4 = vrot.slane %v716_v46, 1 }
 0x18d   : > { %v764_v0 = vadd.f32 %v763_v15, %v762_v6  ;;  %v741_v5 = vadd.f32 %v740_v47, %v739_v21 }
 0x18e   : > { %v718_v31 = vadd.f32 %v717_v4, %v716_v46 }
 0x18f   : > { %v765_v54 = vrot.slane %v764_v0, 2  ;;  %v742_v9 = vrot.slane %v741_v5, 1 }
 0x190   : > { %1784 = vpush %v718_v31 }
 0x191   : > { %v803_v19 = vpop.xlane.xlu1 %802  ;;  %v766_v20 = vadd.f32 %v765_v54, %v764_v0  ;;  %v743_v13 = vadd.f32 %v742_v9, %v741_v5 }
 0x192   : > { %v804_v1 = vrot.slane %v803_v19, 4 }
 0x193   : > { %v767_v56 = vrot.slane %v766_v20, 1  ;;  %v828_v23 = vpop.xlane.xlu0 %827  ;;  %1786 = vpush %v743_v13 }
 0x194   : > { %v805_v61 = vadd.f32 %v804_v1, %v803_v19  ;;  %v829_v27 = vrot.slane %v828_v23, 4 }
 0x195   : > { %v768_v52 = vadd.f32 %v767_v56, %v766_v20 }
 0x196   : > { %v806_v12 = vrot.slane %v805_v61, 2  ;;  %v830_v14 = vadd.f32 %v829_v27, %v828_v23  ;;  %s3382_s29 = spop %1772 }
 0x197   : > { %v853_v53 = vpop.xlane.xlu1 %852  ;;  %1788 = vpush %v768_v52 }
 0x198   : > { %v854_v29 = vrot.slane %v853_v53, 4  ;;  %v807_v24 = vadd.f32 %v806_v12, %v805_v61  ;;  %v831_v40 = vrot.slane %v830_v14, 2 }
 0x19a   : > { %v855_v28 = vadd.f32 %v854_v29, %v853_v53  ;;  %v808_v30 = vrot.slane %v807_v24, 1  ;;  %v832_v55 = vadd.f32 %v831_v40, %v830_v14 }
 0x19c   : > { %v856_v41 = vrot.slane %v855_v28, 2  ;;  %v809_v58 = vadd.f32 %v808_v30, %v807_v24  ;;  %v833_v16 = vrot.slane %v832_v55, 1 }
 0x19e   : > { %v894_v59 = vpop.xlane.xlu0 %893  ;;  %1790 = vpush %v809_v58  ;;  %v857_v42 = vadd.f32 %v856_v41, %v855_v28  ;;  %v834_v48 = vadd.f32 %v833_v16, %v832_v55 }
 0x19f   : > { %v895_v32 = vrot.slane %v894_v59, 4 }
 0x1a0   : > { %v858_v33 = vrot.slane %v857_v42, 1  ;;  %v919_v26 = vpop.xlane.xlu1 %918  ;;  %1792 = vpush %v834_v48 }
 0x1a1   : > { %v896_v11 = vadd.f32 %v895_v32, %v894_v59  ;;  %v920_v49 = vrot.slane %v919_v26, 4 }
 0x1a2   : > { %v859_v43 = vadd.f32 %v858_v33, %v857_v42 }
 0x1a3   : > { %v897_v50 = vrot.slane %v896_v11, 2  ;;  %v921_v35 = vadd.f32 %v920_v49, %v919_v26 }
 0x1a4   : > { %1794 = vpush %v859_v43 }
 0x1a5   : > { %v944_v8 = vpop.xlane.xlu0 %943  ;;  %v898_v51 = vadd.f32 %v897_v50, %v896_v11  ;;  %v922_v10 = vrot.slane %v921_v35, 2 }
 0x1a6   : > { %v945_v36 = vrot.slane %v944_v8, 4 }
 0x1a7   : > { %v899_v3 = vrot.slane %v898_v51, 1  ;;  %v923_v44 = vadd.f32 %v922_v10, %v921_v35 }
 0x1a8   : > { %v946_v62 = vadd.f32 %v945_v36, %v944_v8 }
 0x1a9   : > { %v900_v60 = vadd.f32 %v899_v3, %v898_v51  ;;  %v924_v34 = vrot.slane %v923_v44, 1 }
 0x1aa   : > { %v947_v45 = vrot.slane %v946_v62, 2  ;;  %v985_v37 = vpop.xlane.xlu1 %984 }
 0x1ab   : > { %1796 = vpush %v900_v60  ;;  %v986_v57 = vrot.slane %v985_v37, 4  ;;  %v925_v17 = vadd.f32 %v924_v34, %v923_v44 }
 0x1ac   : > { %v948_v7 = vadd.f32 %v947_v45, %v946_v62 }
 0x1ad   : > { %v987_v18 = vadd.f32 %v986_v57, %v985_v37  ;;  %1798 = vpush %v925_v17 }
 0x1ae   : > { %v1010_v38 = vpop.xlane.xlu0 %1009  ;;  %v949_v22 = vrot.slane %v948_v7, 1 }
 0x1af   : > { %v1011_v2 = vrot.slane %v1010_v38, 4  ;;  %v988_v39 = vrot.slane %v987_v18, 2 }
 0x1b0   : > { %v950_v63 = vadd.f32 %v949_v22, %v948_v7 }
 0x1b1   : > { %v1012_v25 = vadd.f32 %v1011_v2, %v1010_v38  ;;  %v989_v6 = vadd.f32 %v988_v39, %v987_v18  ;;  %s3384_s30 = spop %1774 }
 0x1b2   : > { %v1035_v21 = vpop.xlane.xlu1 %1034  ;;  %1800 = vpush %v950_v63  ;;  %s3386_s4 = spop %1776 }
 0x1b3   : > { %v1013_v46 = vrot.slane %v1012_v25, 2  ;;  %v1036_v15 = vrot.slane %v1035_v21, 4  ;;  %v990_v47 = vrot.slane %v989_v6, 1  ;;  %s3388_s5 = spop %1778 }
 0x1b5   : > { %v1037_v4 = vadd.f32 %v1036_v15, %v1035_v21  ;;  %v1014_v0 = vadd.f32 %v1013_v46, %v1012_v25  ;;  %v991_v31 = vadd.f32 %v990_v47, %v989_v6 }
 0x1b7   : > { %v1038_v5 = vrot.slane %v1037_v4, 2  ;;  %v1015_v54 = vrot.slane %v1014_v0, 1  ;;  %1802 = vpush %v991_v31  ;;  %s3390_s6 = spop %1780 }
 0x1b9   : > { %v1076_v9 = vpop.xlane.xlu0 %1075  ;;  %v1016_v19 = vadd.f32 %v1015_v54, %v1014_v0  ;;  %v1039_v20 = vadd.f32 %v1038_v5, %v1037_v4 }
 0x1ba   : > { %v1077_v1 = vrot.slane %v1076_v9, 4 }
 0x1bb   : > { %1804 = vpush %v1016_v19  ;;  %v1040_v13 = vrot.slane %v1039_v20, 1  ;;  %v1101_v61 = vpop.xlane.xlu1 %1100  ;;  %s3392_s7 = spop %1782 }
 0x1bc   : > { %v1078_v56 = vadd.f32 %v1077_v1, %v1076_v9  ;;  %v1102_v23 = vrot.slane %v1101_v61, 4 }
 0x1bd   : > { %v1041_v27 = vadd.f32 %v1040_v13, %v1039_v20 }
 0x1be   : > { %v1079_v52 = vrot.slane %v1078_v56, 2  ;;  %v1103_v12 = vadd.f32 %v1102_v23, %v1101_v61 }
 0x1bf   : > { %v1126_v14 = vpop.xlane.xlu0 %1125  ;;  %1806 = vpush %v1041_v27 }
 0x1c0   : > { %v1127_v53 = vrot.slane %v1126_v14, 4  ;;  %v1080_v29 = vadd.f32 %v1079_v52, %v1078_v56  ;;  %v1104_v24 = vrot.slane %v1103_v12, 2 }
 0x1c1   : > { %s3394_s8 = spop %1784 }
 0x1c2   : > { %v1128_v40 = vadd.f32 %v1127_v53, %v1126_v14  ;;  %v1081_v28 = vrot.slane %v1080_v29, 1  ;;  %v1105_v30 = vadd.f32 %v1104_v24, %v1103_v12 }
 0x1c4   : > { %v1129_v55 = vrot.slane %v1128_v40, 2  ;;  %v1082_v41 = vadd.f32 %v1081_v28, %v1080_v29  ;;  %v1106_v58 = vrot.slane %v1105_v30, 1  ;;  %s3396_s9 = spop %1786 }
 0x1c6   : > { %v1167_v16 = vpop.xlane.xlu1 %1166  ;;  %1808 = vpush %v1082_v41  ;;  %v1130_v59 = vadd.f32 %v1129_v55, %v1128_v40  ;;  %v1107_v32 = vadd.f32 %v1106_v58, %v1105_v30 }
 0x1c7   : > { %v1168_v42 = vrot.slane %v1167_v16, 4 }
 0x1c8   : > { %v1131_v48 = vrot.slane %v1130_v59, 1  ;;  %v1192_v11 = vpop.xlane.xlu0 %1191  ;;  %1810 = vpush %v1107_v32  ;;  %s3398_s10 = spop %1788 }
 0x1c9   : > { %v1169_v33 = vadd.f32 %v1168_v42, %v1167_v16  ;;  %v1193_v26 = vrot.slane %v1192_v11, 4 }
 0x1ca   : > { %v1132_v49 = vadd.f32 %v1131_v48, %v1130_v59 }
 0x1cb   : > { %v1170_v43 = vrot.slane %v1169_v33, 2  ;;  %v1194_v50 = vadd.f32 %v1193_v26, %v1192_v11 }
 0x1cc   : > { %v1217_v35 = vpop.xlane.xlu1 %1216  ;;  %1812 = vpush %v1132_v49 }
 0x1cd   : > { %v1218_v8 = vrot.slane %v1217_v35, 4  ;;  %v1171_v51 = vadd.f32 %v1170_v43, %v1169_v33  ;;  %v1195_v10 = vrot.slane %v1194_v50, 2 }
 0x1cf   : > { %v1219_v36 = vadd.f32 %v1218_v8, %v1217_v35  ;;  %v1172_v3 = vrot.slane %v1171_v51, 1  ;;  %v1196_v62 = vadd.f32 %v1195_v10, %v1194_v50  ;;  %s3400_s11 = spop %1790 }
 0x1d1   : > { %v1220_v44 = vrot.slane %v1219_v36, 2  ;;  %v1173_v60 = vadd.f32 %v1172_v3, %v1171_v51  ;;  %v1197_v45 = vrot.slane %v1196_v62, 1  ;;  %s3402_s12 = spop %1792 }
 0x1d3   : > { %v1258_v34 = vpop.xlane.xlu0 %1257  ;;  %1814 = vpush %v1173_v60  ;;  %v1221_v37 = vadd.f32 %v1220_v44, %v1219_v36  ;;  %v1198_v17 = vadd.f32 %v1197_v45, %v1196_v62 }
 0x1d4   : > { %v1259_v57 = vrot.slane %v1258_v34, 4 }
 0x1d5   : > { %v1222_v7 = vrot.slane %v1221_v37, 1  ;;  %v1283_v38 = vpop.xlane.xlu1 %1282  ;;  %1816 = vpush %v1198_v17  ;;  %s3404_s13 = spop %1794  ;;  %v629_v17 = vstv %s3388_s5 }
 0x1d6   : > { %v1260_v18 = vadd.f32 %v1259_v57, %v1258_v34  ;;  %v1284_v22 = vrot.slane %v1283_v38, 4 }
 0x1d7   : > { %v1223_v2 = vadd.f32 %v1222_v7, %v1221_v37  ;;  %v654_v7 = vstv %s3390_s6 }
 0x1d8   : > { %v1261_v39 = vrot.slane %v1260_v18, 2  ;;  %v1285_v63 = vadd.f32 %v1284_v22, %v1283_v38  ;;  %v679_v38 = vstv %s3392_s7  ;;  %v720_v22 = vstv %s3394_s8 }
 0x1d9   : > { %1818 = vpush %v1223_v2  ;;  %v745_v2 = vstv %s3396_s9 }
 0x1da   : > { %v1308_v25 = vpop.xlane.xlu0 %1307  ;;  %v1262_v21 = vadd.f32 %v1261_v39, %v1260_v18  ;;  %v1286_v6 = vrot.slane %v1285_v63, 2  ;;  %v554_v18 = vstv %s3382_s29  ;;  %v571_v39 = vstv %s3384_s30 }
 0x1db   : > { %v1309_v46 = vrot.slane %v1308_v25, 4 }
 0x1dc   : > { %v1263_v15 = vrot.slane %v1262_v21, 1  ;;  %v1287_v4 = vadd.f32 %v1286_v6, %v1285_v63  ;;  %s3406_s14 = spop %1796  ;;  %v588_v63 = vstv %s3386_s4  ;;  %v1500_v6 = vsel %vm1499_vm2, %v554_v18, %v629_v17 }
 0x1dd   : > { %v1310_v47 = vadd.f32 %v1309_v46, %v1308_v25  ;;  %v770_v25 = vstv %s3398_s10  ;;  %v1519_v46 = vsel %vm1499_vm2, %v571_v39, %v654_v7 }
 0x1de   : > { %v1264_v0 = vadd.f32 %v1263_v15, %v1262_v21  ;;  %v1288_v5 = vrot.slane %v1287_v4, 1  ;;  %s3408_s19 = spop %1798  ;;  %v811_v21 = vstv %s3400_s11  ;;  %v836_v15 = vstv %s3402_s12  ;;  %s1651_s11 = sshll.u32 %s3567_s0, 2 }
 0x1df   : > { %v1311_v31 = vrot.slane %v1310_v47, 2  ;;  %v1349_v54 = vpop.xlane.xlu1 %1348 }
 0x1e0   : > { %1820 = vpush %v1264_v0  ;;  %v1350_v9 = vrot.slane %v1349_v54, 4  ;;  %v1289_v19 = vadd.f32 %v1288_v5, %v1287_v4  ;;  %v1529_v4 = vsel %vm1499_vm2, %v588_v63, %v679_v38  ;;  %v1502_v0 = vsel %vm1501_vm3, %v1500_v6, %v720_v22 }
 0x1e1   : > { %v1312_v20 = vadd.f32 %v1311_v31, %v1310_v47  ;;  %v861_v47 = vstv %s3404_s13  ;;  %v1520_v31 = vsel %vm1501_vm3, %v1519_v46, %v745_v2  ;;  %v902_v5 = vstv %s3406_s14 }
 0x1e2   : > { %v1351_v1 = vadd.f32 %v1350_v9, %v1349_v54  ;;  %1822 = vpush %v1289_v19  ;;  %v1530_v54 = vsel %vm1501_vm3, %v1529_v4, %v770_v25  ;;  %v1504_v9 = vsel %vm1503_vm6, %v1502_v0, %v811_v21  ;;  %v927_v19 = vstv %s3408_s19  ;;  %s256_s19 = scalar_lea.vmem %s3519_s3, %s1651_s11 }
 0x1e3   : > { %v1374_v13 = vpop.xlane.xlu0 %1373  ;;  %v1313_v56 = vrot.slane %v1312_v20, 1  ;;  %s3410_s20 = spop %1800 }
 0x1e4   : > { %v1375_v61 = vrot.slane %v1374_v13, 4  ;;  %v1352_v23 = vrot.slane %v1351_v1, 2 }
 0x1e5   : > { %v1314_v27 = vadd.f32 %v1313_v56, %v1312_v20  ;;  %v952_v20 = vstv %s3410_s20 }
 0x1e6   : > { %v1376_v52 = vadd.f32 %v1375_v61, %v1374_v13  ;;  %v1399_v12 = vpop.xlane.xlu1 %1398  ;;  %v1353_v14 = vadd.f32 %v1352_v23, %v1351_v1  ;;  %v1521_v1 = vsel %vm1503_vm6, %v1520_v31, %v836_v15  ;;  %v1531_v13 = vsel %vm1503_vm6, %v1530_v54, %v861_v47 }
 0x1e7   : > { %1824 = vpush %v1314_v27  ;;  %v1400_v29 = vrot.slane %v1399_v12, 4  ;;  %v1506_v23 = vsel %vm1505_vm7, %v1504_v9, %v902_v5 }
 0x1e8   : > { %v1377_v53 = vrot.slane %v1376_v52, 2  ;;  %v1354_v24 = vrot.slane %v1353_v14, 1  ;;  %s3412_s25 = spop %1802 }
 0x1e9   : > { %v1401_v40 = vadd.f32 %v1400_v29, %v1399_v12  ;;  %v993_v56 = vstv %s3412_s25 }
 0x1ea   : > { %v1378_v28 = vadd.f32 %v1377_v53, %v1376_v52  ;;  %v1355_v30 = vadd.f32 %v1354_v24, %v1353_v14  ;;  %v1522_v14 = vsel %vm1505_vm7, %v1521_v1, %v927_v19  ;;  %v1532_v53 = vsel %vm1505_vm7, %v1531_v13, %v952_v20 }
 0x1eb   : > { %v1402_v55 = vrot.slane %v1401_v40, 2 }
 0x1ec   : > { %v1379_v41 = vrot.slane %v1378_v28, 1  ;;  %1826 = vpush %v1355_v30  ;;  %s3414_s26 = spop %1804 }
 0x1ed   : > { %v1440_v58 = vpop.xlane.xlu0 %1439  ;;  %v1403_v59 = vadd.f32 %v1402_v55, %v1401_v40  ;;  %v1018_v61 = vstv %s3414_s26  ;;  %v1508_v40 = vsel %vm1507_vm8, %v1506_v23, %v993_v56 }
 0x1ee   : > { %v1380_v16 = vadd.f32 %v1379_v41, %v1378_v28  ;;  %v1441_v42 = vrot.slane %v1440_v58, 4  ;;  %v1523_v28 = vsel %vm1507_vm8, %v1522_v14, %v1018_v61 }
 0x1ef   : > { %v1404_v32 = vrot.slane %v1403_v59, 1 }
 0x1f0   : > { %1828 = vpush %v1380_v16  ;;  %v1442_v48 = vadd.f32 %v1441_v42, %v1440_v58  ;;  %v1465_v33 = vpop.xlane.xlu1 %1464  ;;  %s3416_s28 = spop %1806 }
 0x1f1   : > { %v1466_v11 = vrot.slane %v1465_v33, 4  ;;  %v1405_v26 = vadd.f32 %v1404_v32, %v1403_v59  ;;  %v1043_v27 = vstv %s3416_s28 }
 0x1f2   : > { %v1443_v49 = vrot.slane %v1442_v48, 2  ;;  %v1533_v41 = vsel %vm1507_vm8, %v1532_v53, %v1043_v27 }
 0x1f3   : > { %v1467_v43 = vadd.f32 %v1466_v11, %v1465_v33  ;;  %v1490_v50 = vpop.xlane.xlu0 %1489  ;;  %1830 = vpush %v1405_v26 }
 0x1f4   : > { %v1491_v35 = vrot.slane %v1490_v50, 4  ;;  %v1444_v8 = vadd.f32 %v1443_v49, %v1442_v48 }
 0x1f5   : > { %v1468_v51 = vrot.slane %v1467_v43, 2 }
 0x1f6   : > { %v1492_v10 = vadd.f32 %v1491_v35, %v1490_v50  ;;  %v1445_v36 = vrot.slane %v1444_v8, 1 }
 0x1f7   : > { %v1469_v3 = vadd.f32 %v1468_v51, %v1467_v43  ;;  %s3418_s22 = spop %1808 }
 0x1f8   : > { %v1493_v62 = vrot.slane %v1492_v10, 2  ;;  %v1446_v44 = vadd.f32 %v1445_v36, %v1444_v8  ;;  %v1084_v52 = vstv %s3418_s22 }
 0x1f9   : > { %v1470_v60 = vrot.slane %v1469_v3, 1  ;;  %s3420_s24 = spop %1810  ;;  %v1510_v58 = vsel %vm1509_vm9, %v1508_v40, %v1084_v52 }
 0x1fa   : > { %v1494_v45 = vadd.f32 %v1493_v62, %v1492_v10  ;;  %1832 = vpush %v1446_v44  ;;  %v1109_v12 = vstv %s3420_s24 }
 0x1fb   : > { %v1471_v34 = vadd.f32 %v1470_v60, %v1469_v3  ;;  %v1524_v16 = vsel %vm1509_vm9, %v1523_v28, %v1109_v12 }
 0x1fc   : > { %v1495_v37 = vrot.slane %v1494_v45, 1 }
 0x1fd   : > { %1834 = vpush %v1471_v34  ;;  %s3422_s27 = spop %1812 }
 0x1fe   : > { %v1496_v57 = vadd.f32 %v1495_v37, %v1494_v45  ;;  %v1134_v29 = vstv %s3422_s27 }
 0x1ff   : > { %v1534_v42 = vsel %vm1509_vm9, %v1533_v41, %v1134_v29 }
 0x200   : > { %1836 = vpush %v1496_v57 }
 0x204   : > { %s3426_s17 = spop %1814 }
 0x205   : > { %v1175_v30 = vstv %s3426_s17 }
 0x206   : > { %s3432_s23 = spop %1816  ;;  %v1512_v11 = vsel %vm1511_vm10, %v1510_v58, %v1175_v30 }
 0x207   : > { %v1200_v24 = vstv %s3432_s23 }
 0x208   : > { %v1525_v32 = vsel %vm1511_vm10, %v1524_v16, %v1200_v24 }
 0x20a   : > { %s3438_s5 = spop %1818 }
 0x20b   : > { %v1225_v48 = vstv %s3438_s5 }
 0x20c   : > { %v1535_v10 = vsel %vm1511_vm10, %v1534_v42, %v1225_v48 }
 0x211   : > { %s3444_s29 = spop %1820 }
 0x212   : > { %v1266_v33 = vstv %s3444_s29 }
 0x213   : > { %s3450_s30 = spop %1822  ;;  %v1514_v36 = vsel %vm1513_vm11, %v1512_v11, %v1266_v33 }
 0x214   : > { %v1291_v55 = vstv %s3450_s30 }
 0x215   : > { %v1526_v26 = vsel %vm1513_vm11, %v1525_v32, %v1291_v55 }
 0x218   : > { %s3456_s4 = spop %1824 }
 0x219   : > { %v1316_v49 = vstv %s3456_s4 }
 0x21a   : > { %v1536_v62 = vsel %vm1513_vm11, %v1535_v10, %v1316_v49 }
 0x21d   : > { %s3462_s6 = spop %1826 }
 0x21e   : > { %v1357_v43 = vstv %s3462_s6 }
 0x21f   : > { %v1516_v44 = vsel %vm1515_vm12, %v1514_v36, %v1357_v43 }
 0x221   : > { %s1829_s7 = spop %1828 }
 0x222   : > { %v1382_v59 = vstv %s1829_s7 }
 0x223   : > { %v1527_v50 = vsel %vm1515_vm12, %v1526_v26, %v1382_v59 }
 0x224   : > { %s1831_s8 = spop %1830 }
 0x225   : > { %v1407_v35 = vstv %s1831_s8 }
 0x226   : > { %v1537_v45 = vsel %vm1515_vm12, %v1536_v62, %v1407_v35 }
 0x22b   : > { %s1833_s9 = spop %1832 }
 0x22c   : > { %v1448_v8 = vstv %s1833_s9 }
 0x22d   : > { %v1518_v34 = vsel %vm1517_vm13, %v1516_v44, %v1448_v8 }
 0x22e   : > { %s1835_s10 = spop %1834 }
 0x22f   : > { %v1473_v51 = vstv %s1835_s10 }
 0x230   : > { %v1528_v3 = vsel %vm1517_vm13, %v1527_v50, %v1473_v51 }
 0x231   : > { %v1540_v60 = vrot.slane %v1528_v3, 7  ;;  %s1837_s12 = spop %1836 }
 0x232   : > { %v1498_v37 = vstv %s1837_s12 }
 0x233   : > { %v1546_v57 = vsel %vm1545_vm14, %v1518_v34, %v1540_v60  ;;  %v1538_v17 = vsel %vm1517_vm13, %v1537_v45, %v1498_v37 }
 0x234   : > { %v1543_v7 = vrot.slane %v1538_v17, 6 }
 0x236   : > { %v1548_v18 = vsel %vm1547_vm15, %v1546_v57, %v1543_v7 }
 0x237   : > { %1550 = vst.msk [vmem:[%s256_s19] sm:$0x7] %vm1549_vm5, %v1548_v18 }
 0x238 PF: > { %p17_p6 = scmp.ge.s32.totalorder %s2079_s18, 4   ;;  %s3562_s14 = smov %s2014_s15 }
 0x239   : > { %s3563_s15 = smov %s2018_s16  ;;  %s3564_s16 = smov %s2089_s21 }
 0x23a   : > { %s3565_s17 = smov %s2079_s18  ;;  %19 = sbr.rel (!%p17_p6) target bundleno = 7 (0x7), region = 92 }
 0x241   :  { %1570 = vsyncpa [#allocation4], 1 }
 0x242   :  { %1572 = vsyncpa [#allocation4 + $0x1], 1 }
 0x243   :  { %1573 = vsyncpa [#allocation6], 1 }
 0x244   :  { %1575 = vsyncpa [#allocation6 + $0x1], 1 }

</bundles_post_ra>
